<compile_context>
chip_gen: v5e
topology: v5e:2x2
jax: 0.10.0
libtpu: 0.0.40
codegen_flags: <defaults>
</compile_context>

<pallas_src>
import functools

import jax
import jax.numpy as jnp
from jax.experimental import pallas as pl
from jax.experimental.pallas import tpu as pltpu


def _pick_tile(dim, candidates):
    """Largest preferred tile that evenly divides `dim`, else the full dim."""
    for c in candidates:
        if c <= dim and dim % c == 0:
            return c
    return dim


def _tpu_budget():
    """(vmem_limit_bytes, big_vmem) chosen from the physical VMEM capacity."""
    cap = 64 * 1024 * 1024
    try:
        info = pltpu.get_tpu_info()
        cap = int(getattr(info, "vmem_capacity_bytes", cap) or cap)
    except Exception:
        pass
    if cap >= 100 * 1024 * 1024:          # v5e / v6e: 128 MiB physical VMEM
        return 96 * 1024 * 1024, True
    return 48 * 1024 * 1024, False        # v7x: 64 MiB physical VMEM


# ---------------------------------------------------------------------------
# QKV projection + fused per-head RMSNorm(q, k).
# grid = (B, N//tn, C//tk); K axis (last) is the reduction ("arbitrary").
# Outputs q, k, v in head-major bf16 layout (B, H, N, Dh).
# ---------------------------------------------------------------------------
def _qkv_proj_kernel(x_ref, w_ref, qw_ref, kw_ref,
                     q_ref, k_ref, v_ref, acc_ref, *, n_heads, eps):
    ki = pl.program_id(2)

    @pl.when(ki == 0)
    def _init():
        acc_ref[...] = jnp.zeros_like(acc_ref)

    # (tn, tk) bf16 @ (tk, 3C) bf16 -> f32 accumulate (single wide MXU push).
    acc_ref[...] += jnp.dot(x_ref[...], w_ref[...],
                            preferred_element_type=jnp.float32)

    @pl.when(ki == pl.num_programs(2) - 1)
    def _store():
        qw = qw_ref[...]            # (1, Dh) f32, softmax scale already folded in
        kw = kw_ref[...]            # (1, Dh) f32
        c = acc_ref.shape[-1] // 3
        dh = c // n_heads
        for h in range(n_heads):    # once per m-tile (store step only)
            qh = acc_ref[:, h * dh:(h + 1) * dh]
            kh = acc_ref[:, c + h * dh:c + (h + 1) * dh]
            vh = acc_ref[:, 2 * c + h * dh:2 * c + (h + 1) * dh]
            qn = qh * jax.lax.rsqrt(jnp.mean(qh * qh, axis=-1, keepdims=True) + eps) * qw
            kn = kh * jax.lax.rsqrt(jnp.mean(kh * kh, axis=-1, keepdims=True) + eps) * kw
            q_ref[h] = qn.astype(jnp.bfloat16)
            k_ref[h] = kn.astype(jnp.bfloat16)
            v_ref[h] = vh.astype(jnp.bfloat16)


def _qkv_proj(x, w_qkv_bf16, qw_scaled, kw, n_heads, eps, tn=None, tk=None):
    B, N, C = x.shape
    Dh = C // n_heads
    vmem_limit, big = _tpu_budget()
    if tn is None:
        tn = _pick_tile(N, (1024, 512, 384, 256, 128) if big else (512, 256, 128))
    if tk is None:
        tk = _pick_tile(C, (512, 384, 256, 128) if big else (256, 128))

    kernel = functools.partial(_qkv_proj_kernel, n_heads=n_heads, eps=eps)
    hm_shape = jax.ShapeDtypeStruct((B, n_heads, N, Dh), jnp.bfloat16)
    out_map = lambda b, ni, ki: (b, 0, ni, 0)

    return pl.pallas_call(
        kernel,
        out_shape=(hm_shape, hm_shape, hm_shape),
        grid=(B, N // tn, C // tk),
        in_specs=[
            pl.BlockSpec((None, tn, tk), lambda b, ni, ki: (b, ni, ki)),
            pl.BlockSpec((tk, 3 * C), lambda b, ni, ki: (ki, 0)),
            pl.BlockSpec((1, Dh), lambda b, ni, ki: (0, 0)),
            pl.BlockSpec((1, Dh), lambda b, ni, ki: (0, 0)),
        ],
        out_specs=(
            pl.BlockSpec((None, n_heads, tn, Dh), out_map),
            pl.BlockSpec((None, n_heads, tn, Dh), out_map),
            pl.BlockSpec((None, n_heads, tn, Dh), out_map),
        ),
        scratch_shapes=[pltpu.VMEM((tn, 3 * C), jnp.float32)],
        compiler_params=pltpu.CompilerParams(
            dimension_semantics=("parallel", "parallel", "arbitrary"),
            vmem_limit_bytes=vmem_limit,
        ),
        cost_estimate=pl.CostEstimate(
            flops=2 * B * N * C * 3 * C,
            transcendentals=2 * B * N * n_heads,
            bytes_accessed=(B * N * C * 2
                            + B * (N // tn) * C * 3 * C * 2
                            + 3 * B * N * C * 2),
        ),
    )(x.astype(jnp.bfloat16), w_qkv_bf16, qw_scaled, kw)


# ---------------------------------------------------------------------------
# Heads-batched flash attention with fused output projection (+bias).
# grid = (B, N//tq, N//tkv); KV axis is "arbitrary" (online softmax).
# q/k/v come in head-major (H, t, Dh) blocks; output block (tq, C) is
# lane-dense and written once at the last KV step.
# ---------------------------------------------------------------------------
def _flash_attn_kernel(q_ref, k_ref, v_ref, wout_ref, bout_ref, o_ref,
                       m_scr, l_scr, acc_scr, *, n_heads):
    kt = pl.program_id(2)

    @pl.when(kt == 0)
    def _init():
        m_scr[...] = jnp.full_like(m_scr, -jnp.inf)
        l_scr[...] = jnp.zeros_like(l_scr)
        acc_scr[...] = jnp.zeros_like(acc_scr)

    q = q_ref[...]    # (H, tq, Dh) bf16 -- RMSNorm + 1/sqrt(Dh) already applied
    k = k_ref[...]    # (H, tk, Dh) bf16 -- RMSNorm already applied
    v = v_ref[...]    # (H, tk, Dh) bf16

    # Batched scores over heads (leading batch dim), f32 accumulation on MXU.
    s = jnp.einsum("hqd,hkd->hqk", q, k,
                   preferred_element_type=jnp.float32)          # (H, tq, tk)

    m_prev = m_scr[...]                                          # (H, tq, 1)
    m_new = jnp.maximum(m_prev, jnp.max(s, axis=-1, keepdims=True))
    alpha = jnp.exp(m_prev - m_new)
    p = jnp.exp(s - m_new)                                       # f32 softmax math

    l_scr[...] = alpha * l_scr[...] + jnp.sum(p, axis=-1, keepdims=True)
    acc_scr[...] = alpha * acc_scr[...] + jnp.einsum(
        "hqk,hkd->hqd", p.astype(jnp.bfloat16), v,
        preferred_element_type=jnp.float32)
    m_scr[...] = m_new

    @pl.when(kt == pl.num_programs(2) - 1)
    def _finalize():
        inv_l = pl.reciprocal(l_scr[...], approx=True)           # EUP reciprocal
        attn = acc_scr[...] * inv_l                              # (H, tq, Dh) f32
        merged = jnp.concatenate(
            [attn[h].astype(jnp.bfloat16) for h in range(n_heads)],
            axis=-1)                                             # (tq, C) bf16
        out = jnp.dot(merged, wout_ref[...],
                      preferred_element_type=jnp.float32)        # full-depth MXU
        o_ref[...] = out + bout_ref[...]


def _flash_attn_out(q, k, v, w_out_bf16, b_out, n_heads, tq=None, tkv=None):
    B, H, N, Dh = q.shape
    C = H * Dh
    vmem_limit, big = _tpu_budget()
    if tq is None:
        # v7x: keep tq <= 256 under the 64 MiB budget; v5e/v6e go larger.
        tq = _pick_tile(N, (512, 256, 128) if big else (256, 128))
    if tkv is None:
        tkv = _pick_tile(N, (512, 256, 128))

    kernel = functools.partial(_flash_attn_kernel, n_heads=n_heads)

    return pl.pallas_call(
        kernel,
        out_shape=jax.ShapeDtypeStruct((B, N, C), jnp.float32),
        grid=(B, N // tq, N // tkv),
        in_specs=[
            pl.BlockSpec((None, H, tq, Dh), lambda b, qi, kt: (b, 0, qi, 0)),
            pl.BlockSpec((None, H, tkv, Dh), lambda b, qi, kt: (b, 0, kt, 0)),
            pl.BlockSpec((None, H, tkv, Dh), lambda b, qi, kt: (b, 0, kt, 0)),
            pl.BlockSpec((C, C), lambda b, qi, kt: (0, 0)),
            pl.BlockSpec((1, C), lambda b, qi, kt: (0, 0)),
        ],
        out_specs=pl.BlockSpec((None, tq, C), lambda b, qi, kt: (b, qi, 0)),
        scratch_shapes=[
            pltpu.VMEM((H, tq, 1), jnp.float32),    # running max
            pltpu.VMEM((H, tq, 1), jnp.float32),    # running denom
            pltpu.VMEM((H, tq, Dh), jnp.float32),   # running numerator
        ],
        compiler_params=pltpu.CompilerParams(
            dimension_semantics=("parallel", "parallel", "arbitrary"),
            vmem_limit_bytes=vmem_limit,
        ),
        cost_estimate=pl.CostEstimate(
            flops=4 * B * H * N * N * Dh + 2 * B * N * C * C,
            transcendentals=2 * B * H * N * N,
            bytes_accessed=(B * N * C * 2                       # q
                            + 2 * B * N * C * 2 * (N // tq)     # k, v re-streamed
                            + B * (N // tq) * C * C * 2         # w_out
                            + B * N * C * 4),                   # output
        ),
    )(q, k, v, w_out_bf16, b_out)


# ---------------------------------------------------------------------------
# Forward pass (matches Attn.forward; `y` is unused, as in the module).
# ---------------------------------------------------------------------------
def prepare_params(params, n_heads):
    """One-time cast/reshape of weights (outside the jitted forward)."""
    C = params["w_qkv"].shape[0]
    Dh = C // n_heads
    scale = 1.0 / (float(Dh) ** 0.5)
    return {
        "w_qkv": params["w_qkv"].astype(jnp.bfloat16),                   # (C, 3C)
        "w_out": params["w_out"].astype(jnp.bfloat16),                   # (C, C)
        "b_out": params["b_out"].reshape(1, C).astype(jnp.float32),
        # Fold the 1/sqrt(Dh) softmax scale into the q RMSNorm weight.
        "w_qnorm": (params["w_qnorm"] * scale).reshape(1, Dh).astype(jnp.float32),
        "w_knorm": params["w_knorm"].reshape(1, Dh).astype(jnp.float32),
    }


def _attn_forward(x, y, prepared, n_heads, eps=1e-6, tiles=None):
    del y  # unused by Attn.forward; kept for signature parity
    B, N, C = x.shape
    assert C % n_heads == 0
    tn = tkk = tq = tkv = None
    if tiles is not None:
        tn, tkk, tq, tkv = tiles

    q, k, v = _qkv_proj(x, prepared["w_qkv"], prepared["w_qnorm"],
                        prepared["w_knorm"], n_heads, eps, tn, tkk)
    return _flash_attn_out(q, k, v, prepared["w_out"], prepared["b_out"],
                           n_heads, tq, tkv)


attn_forward = jax.jit(_attn_forward, static_argnames=("n_heads", "eps", "tiles"))


# ---------------------------------------------------------------------------
# Pure-JAX reference (f32) for correctness.
# ---------------------------------------------------------------------------
def _reference(x, params, n_heads, eps=1e-6):
    B, N, C = x.shape
    Dh = C // n_heads
    qkv = x @ params["w_qkv"]
    q, k, v = jnp.split(qkv, 3, axis=-1)

    def split_heads(t):
        return t.reshape(B, N, n_heads, Dh)

    q, k, v = map(split_heads, (q, k, v))

    def rms(t, w):
        return t * jax.lax.rsqrt(jnp.mean(t * t, axis=-1, keepdims=True) + eps) * w

    q = rms(q, params["w_qnorm"])
    k = rms(k, params["w_knorm"])
    s = jnp.einsum("bqhd,bkhd->bhqk", q, k) / jnp.sqrt(jnp.float32(Dh))
    p = jax.nn.softmax(s, axis=-1)
    o = jnp.einsum("bhqk,bkhd->bqhd", p, v).reshape(B, N, C)
    return o @ params["w_out"] + params["b_out"]


# ---------------------------------------------------------------------------
# Driver
# ---------------------------------------------------------------------------
if __name__ == "__main__":
    def run_case(B, N, C, n_heads, tiles, key):
        Dh = C // n_heads
        k1, k2, k3, k4, k5, k6, k7 = jax.random.split(key, 7)
        params = {
            "w_qkv": 0.05 * jax.random.normal(k1, (C, 3 * C), jnp.float32),
            "w_out": 0.05 * jax.random.normal(k2, (C, C), jnp.float32),
            "b_out": 0.01 * jax.random.normal(k3, (C,), jnp.float32),
            "w_qnorm": 1.0 + 0.1 * jax.random.normal(k4, (Dh,), jnp.float32),
            "w_knorm": 1.0 + 0.1 * jax.random.normal(k5, (Dh,), jnp.float32),
        }
        x = jax.random.normal(k6, (B, N, C), jnp.float32)
        y = jax.random.normal(k7, (B, N, C), jnp.float32)  # unused by forward

        prepared = prepare_params(params, n_heads)
        out = attn_forward(x, y, prepared, n_heads=n_heads, tiles=tiles)
        jax.block_until_ready(out)

        assert out.shape == (B, N, C)
        assert bool(jnp.all(jnp.isfinite(out)))
        ref = _reference(x, params, n_heads)
        err = float(jnp.max(jnp.abs(out - ref)))
        assert bool(jnp.allclose(out, ref, atol=5e-2, rtol=5e-2)), (
            f"mismatch vs reference (max abs err {err:.4f})")

    root = jax.random.PRNGKey(0)
    key_small, key_big = jax.random.split(root)

    # Small shape consistent with the module (full-dim tiles, single kv step).
    run_case(B=2, N=8, C=32, n_heads=4, tiles=None, key=key_small)

    # Multi-tile shape: exercises kt>0 online-softmax rescale, K-axis
    # accumulator revisit in the QKV kernel, and real BlockSpec tiling.
    run_case(B=2, N=256, C=256, n_heads=4, tiles=(128, 128, 128, 128), key=key_big)

    print("KERNEL_OK")
</pallas_src>

<mosaic_0001>
module attributes {stable_mosaic.version = 11 : i64} {
  func.func @_flash_attn_kernel(%arg0: i32, %arg1: i32, %arg2: i32, %arg3: memref<1x4x8x8xbf16, #tpu.memory_space<vmem>>, %arg4: memref<1x4x8x8xbf16, #tpu.memory_space<vmem>>, %arg5: memref<1x4x8x8xbf16, #tpu.memory_space<vmem>>, %arg6: memref<32x32xbf16, #tpu.memory_space<vmem>>, %arg7: memref<1x32xf32, #tpu.memory_space<vmem>>, %arg8: memref<1x8x32xf32, #tpu.memory_space<vmem>>, %arg9: memref<4x8x1xf32, #tpu.memory_space<vmem>>, %arg10: memref<4x8x1xf32, #tpu.memory_space<vmem>>, %arg11: memref<4x8x8xf32, #tpu.memory_space<vmem>>) attributes {dimension_semantics = [#tpu.dimension_semantics<parallel>, #tpu.dimension_semantics<parallel>, #tpu.dimension_semantics<arbitrary>], iteration_bounds = array<i64: 2, 1, 1>, scalar_prefetch = 0 : i64, scratch_operands = 3 : i64, tpu.core_type = #tpu.core_type<tc>, window_params = [{transform_indices = @transform_0, window_bounds = array<i64: 1, 4, 8, 8>}, {transform_indices = @transform_1, window_bounds = array<i64: 1, 4, 8, 8>}, {transform_indices = @transform_2, window_bounds = array<i64: 1, 4, 8, 8>}, {pipeline_mode = #tpu.pipeline_mode<synchronous>, transform_indices = @transform_3, window_bounds = array<i64: 32, 32>}, {pipeline_mode = #tpu.pipeline_mode<synchronous>, transform_indices = @transform_4, window_bounds = array<i64: 1, 32>}, {transform_indices = @transform_5, window_bounds = array<i64: 1, 8, 32>}]} {
    %c0_i32 = arith.constant 0 : i32
    %0 = arith.cmpi eq, %arg2, %c0_i32 : i32
    %1 = arith.extui %0 : i1 to i32
    %c0_i32_0 = arith.constant 0 : i32
    %2 = arith.cmpi ne, %1, %c0_i32_0 : i32
    scf.if %2 {
      %cst_35 = arith.constant 0xFF800000 : f32
      %36 = vector.broadcast %cst_35 : f32 to vector<4x8x1xf32>
      %c0_36 = arith.constant 0 : index
      %c0_37 = arith.constant 0 : index
      %c0_38 = arith.constant 0 : index
      %37 = vector.load %arg9[%c0_36, %c0_37, %c0_38] : memref<4x8x1xf32, #tpu.memory_space<vmem>>, vector<4x8x1xf32>
      tpu.vector_store %arg9[%c0_36, %c0_37, %c0_38], %36 {strides = array<i32>} : memref<4x8x1xf32, #tpu.memory_space<vmem>>, vector<4x8x1xf32>,
      %cst_39 = arith.constant 0.000000e+00 : f32
      %38 = vector.broadcast %cst_39 : f32 to vector<4x8x1xf32>
      %c0_40 = arith.constant 0 : index
      %c0_41 = arith.constant 0 : index
      %c0_42 = arith.constant 0 : index
      %39 = vector.load %arg10[%c0_40, %c0_41, %c0_42] : memref<4x8x1xf32, #tpu.memory_space<vmem>>, vector<4x8x1xf32>
      tpu.vector_store %arg10[%c0_40, %c0_41, %c0_42], %38 {strides = array<i32>} : memref<4x8x1xf32, #tpu.memory_space<vmem>>, vector<4x8x1xf32>,
      %cst_43 = arith.constant 0.000000e+00 : f32
      %40 = vector.broadcast %cst_43 : f32 to vector<4x8x8xf32>
      %c0_44 = arith.constant 0 : index
      %c0_45 = arith.constant 0 : index
      %c0_46 = arith.constant 0 : index
      %41 = vector.load %arg11[%c0_44, %c0_45, %c0_46] : memref<4x8x8xf32, #tpu.memory_space<vmem>>, vector<4x8x8xf32>
      tpu.vector_store %arg11[%c0_44, %c0_45, %c0_46], %40 {strides = array<i32>} : memref<4x8x8xf32, #tpu.memory_space<vmem>>, vector<4x8x8xf32>,
    } else {
    }
    %c0 = arith.constant 0 : index
    %c0_1 = arith.constant 0 : index
    %c0_2 = arith.constant 0 : index
    %c0_3 = arith.constant 0 : index
    %3 = vector.load %arg3[%c0, %c0_1, %c0_2, %c0_3] : memref<1x4x8x8xbf16, #tpu.memory_space<vmem>>, vector<1x4x8x8xbf16>
    %4 = vector.shape_cast %3 : vector<1x4x8x8xbf16> to vector<4x8x8xbf16>
    %c0_4 = arith.constant 0 : index
    %c0_5 = arith.constant 0 : index
    %c0_6 = arith.constant 0 : index
    %c0_7 = arith.constant 0 : index
    %5 = vector.load %arg4[%c0_4, %c0_5, %c0_6, %c0_7] : memref<1x4x8x8xbf16, #tpu.memory_space<vmem>>, vector<1x4x8x8xbf16>
    %6 = vector.shape_cast %5 : vector<1x4x8x8xbf16> to vector<4x8x8xbf16>
    %c0_8 = arith.constant 0 : index
    %c0_9 = arith.constant 0 : index
    %c0_10 = arith.constant 0 : index
    %c0_11 = arith.constant 0 : index
    %7 = vector.load %arg5[%c0_8, %c0_9, %c0_10, %c0_11] : memref<1x4x8x8xbf16, #tpu.memory_space<vmem>>, vector<1x4x8x8xbf16>
    %8 = vector.shape_cast %7 : vector<1x4x8x8xbf16> to vector<4x8x8xbf16>
    "tpu.trace_start"() <{level = 10 : i32, message = "hqd,hkd->hqk"}> : () -> ()
    %cst = arith.constant dense<0.000000e+00> : vector<4x8x8xf32>
    %9 = tpu.matmul %4, %6, %cst {dimension_numbers = #tpu.dot_dimension_numbers<[2], [2], [1], [1], [0, 0, 0, 1, 1, 1], [0], [0]>} : vector<4x8x8xbf16>, vector<4x8x8xbf16>, vector<4x8x8xf32> -> vector<4x8x8xf32>
    "tpu.trace_stop"() : () -> ()
    %c0_12 = arith.constant 0 : index
    %c0_13 = arith.constant 0 : index
    %c0_14 = arith.constant 0 : index
    %10 = vector.load %arg9[%c0_12, %c0_13, %c0_14] : memref<4x8x1xf32, #tpu.memory_space<vmem>>, vector<4x8x1xf32>
    %cst_15 = arith.constant dense<0xFF800000> : vector<4x8xf32>
    %11 = vector.multi_reduction <maximumf>, %9, %cst_15 [2] : vector<4x8x8xf32> to vector<4x8xf32>
    %12 = vector.shape_cast %11 : vector<4x8xf32> to vector<4x8x1xf32>
    %13 = arith.maximumf %10, %12 : vector<4x8x1xf32>
    %14 = arith.subf %10, %13 : vector<4x8x1xf32>
    %15 = math.exp %14 : vector<4x8x1xf32>
    %16 = vector.broadcast %13 : vector<4x8x1xf32> to vector<4x8x8xf32>
    %17 = arith.subf %9, %16 : vector<4x8x8xf32>
    %18 = math.exp %17 : vector<4x8x8xf32>
    %c0_16 = arith.constant 0 : index
    %c0_17 = arith.constant 0 : index
    %c0_18 = arith.constant 0 : index
    %19 = vector.load %arg10[%c0_16, %c0_17, %c0_18] : memref<4x8x1xf32, #tpu.memory_space<vmem>>, vector<4x8x1xf32>
    %20 = arith.mulf %15, %19 : vector<4x8x1xf32>
    %cst_19 = arith.constant dense<0.000000e+00> : vector<4x8xf32>
    %21 = vector.multi_reduction <add>, %18, %cst_19 [2] : vector<4x8x8xf32> to vector<4x8xf32>
    %22 = vector.shape_cast %21 : vector<4x8xf32> to vector<4x8x1xf32>
    %23 = arith.addf %20, %22 : vector<4x8x1xf32>
    %c0_20 = arith.constant 0 : index
    %c0_21 = arith.constant 0 : index
    %c0_22 = arith.constant 0 : index
    %24 = vector.load %arg10[%c0_20, %c0_21, %c0_22] : memref<4x8x1xf32, #tpu.memory_space<vmem>>, vector<4x8x1xf32>
    tpu.vector_store %arg10[%c0_20, %c0_21, %c0_22], %23 {strides = array<i32>} : memref<4x8x1xf32, #tpu.memory_space<vmem>>, vector<4x8x1xf32>,
    %c0_23 = arith.constant 0 : index
    %c0_24 = arith.constant 0 : index
    %c0_25 = arith.constant 0 : index
    %25 = vector.load %arg11[%c0_23, %c0_24, %c0_25] : memref<4x8x8xf32, #tpu.memory_space<vmem>>, vector<4x8x8xf32>
    %26 = vector.broadcast %15 : vector<4x8x1xf32> to vector<4x8x8xf32>
    %27 = arith.mulf %26, %25 : vector<4x8x8xf32>
    %28 = arith.truncf %18 : vector<4x8x8xf32> to vector<4x8x8xbf16>
    "tpu.trace_start"() <{level = 10 : i32, message = "hqk,hkd->hqd"}> : () -> ()
    %cst_26 = arith.constant dense<0.000000e+00> : vector<4x8x8xf32>
    %29 = tpu.matmul %28, %8, %cst_26 {dimension_numbers = #tpu.dot_dimension_numbers<[2], [1], [1], [2], [0, 0, 0, 1, 1, 2], [0], [0]>} : vector<4x8x8xbf16>, vector<4x8x8xbf16>, vector<4x8x8xf32> -> vector<4x8x8xf32>
    "tpu.trace_stop"() : () -> ()
    %30 = arith.addf %27, %29 : vector<4x8x8xf32>
    %c0_27 = arith.constant 0 : index
    %c0_28 = arith.constant 0 : index
    %c0_29 = arith.constant 0 : index
    %31 = vector.load %arg11[%c0_27, %c0_28, %c0_29] : memref<4x8x8xf32, #tpu.memory_space<vmem>>, vector<4x8x8xf32>
    tpu.vector_store %arg11[%c0_27, %c0_28, %c0_29], %30 {strides = array<i32>} : memref<4x8x8xf32, #tpu.memory_space<vmem>>, vector<4x8x8xf32>,
    %c0_30 = arith.constant 0 : index
    %c0_31 = arith.constant 0 : index
    %c0_32 = arith.constant 0 : index
    %32 = vector.load %arg9[%c0_30, %c0_31, %c0_32] : memref<4x8x1xf32, #tpu.memory_space<vmem>>, vector<4x8x1xf32>
    tpu.vector_store %arg9[%c0_30, %c0_31, %c0_32], %13 {strides = array<i32>} : memref<4x8x1xf32, #tpu.memory_space<vmem>>, vector<4x8x1xf32>,
    %c0_i32_33 = arith.constant 0 : i32
    %33 = arith.cmpi eq, %arg2, %c0_i32_33 : i32
    %34 = arith.extui %33 : i1 to i32
    %c0_i32_34 = arith.constant 0 : i32
    %35 = arith.cmpi ne, %34, %c0_i32_34 : i32
    scf.if %35 {
      %c0_35 = arith.constant 0 : index
      %c0_36 = arith.constant 0 : index
      %c0_37 = arith.constant 0 : index
      %36 = vector.load %arg10[%c0_35, %c0_36, %c0_37] : memref<4x8x1xf32, #tpu.memory_space<vmem>>, vector<4x8x1xf32>
      %37 = tpu.reciprocal %36 {approx = true} : vector<4x8x1xf32> -> vector<4x8x1xf32>
      %c0_38 = arith.constant 0 : index
      %c0_39 = arith.constant 0 : index
      %c0_40 = arith.constant 0 : index
      %38 = vector.load %arg11[%c0_38, %c0_39, %c0_40] : memref<4x8x8xf32, #tpu.memory_space<vmem>>, vector<4x8x8xf32>
      %39 = vector.broadcast %37 : vector<4x8x1xf32> to vector<4x8x8xf32>
      %40 = arith.mulf %38, %39 : vector<4x8x8xf32>
      %41 = vector.extract_strided_slice %40 {offsets = [0, 0, 0], sizes = [1, 8, 8], strides = [1, 1, 1]} : vector<4x8x8xf32> to vector<1x8x8xf32>
      %42 = vector.shape_cast %41 : vector<1x8x8xf32> to vector<8x8xf32>
      %43 = arith.truncf %42 : vector<8x8xf32> to vector<8x8xbf16>
      %44 = vector.extract_strided_slice %40 {offsets = [1, 0, 0], sizes = [1, 8, 8], strides = [1, 1, 1]} : vector<4x8x8xf32> to vector<1x8x8xf32>
      %45 = vector.shape_cast %44 : vector<1x8x8xf32> to vector<8x8xf32>
      %46 = arith.truncf %45 : vector<8x8xf32> to vector<8x8xbf16>
      %47 = vector.extract_strided_slice %40 {offsets = [2, 0, 0], sizes = [1, 8, 8], strides = [1, 1, 1]} : vector<4x8x8xf32> to vector<1x8x8xf32>
      %48 = vector.shape_cast %47 : vector<1x8x8xf32> to vector<8x8xf32>
      %49 = arith.truncf %48 : vector<8x8xf32> to vector<8x8xbf16>
      %50 = vector.extract_strided_slice %40 {offsets = [3, 0, 0], sizes = [1, 8, 8], strides = [1, 1, 1]} : vector<4x8x8xf32> to vector<1x8x8xf32>
      %51 = vector.shape_cast %50 : vector<1x8x8xf32> to vector<8x8xf32>
      %52 = arith.truncf %51 : vector<8x8xf32> to vector<8x8xbf16>
      %53 = tpu.concatenate %43, %46, %49, %52 in 1 : vector<8x8xbf16>, vector<8x8xbf16>, vector<8x8xbf16>, vector<8x8xbf16> -> vector<8x32xbf16>
      %c0_41 = arith.constant 0 : index
      %c0_42 = arith.constant 0 : index
      %54 = vector.load %arg6[%c0_41, %c0_42] : memref<32x32xbf16, #tpu.memory_space<vmem>>, vector<32x32xbf16>
      %cst_43 = arith.constant dense<0.000000e+00> : vector<8x32xf32>
      %55 = tpu.matmul %53, %54, %cst_43 {dimension_numbers = #tpu.dot_dimension_numbers<[1], [0], [0], [1], [0, 0, 1, 1], [], []>} : vector<8x32xbf16>, vector<32x32xbf16>, vector<8x32xf32> -> vector<8x32xf32>
      %c0_44 = arith.constant 0 : index
      %c0_45 = arith.constant 0 : index
      %56 = vector.load %arg7[%c0_44, %c0_45] : memref<1x32xf32, #tpu.memory_space<vmem>>, vector<1x32xf32>
      %57 = vector.broadcast %56 : vector<1x32xf32> to vector<8x32xf32>
      %58 = arith.addf %55, %57 : vector<8x32xf32>
      %c0_46 = arith.constant 0 : index
      %c0_47 = arith.constant 0 : index
      %c0_48 = arith.constant 0 : index
      %59 = vector.load %arg8[%c0_46, %c0_47, %c0_48] : memref<1x8x32xf32, #tpu.memory_space<vmem>>, vector<1x8x32xf32>
      %60 = vector.shape_cast %59 : vector<1x8x32xf32> to vector<8x32xf32>
      %61 = vector.shape_cast %58 : vector<8x32xf32> to vector<1x8x32xf32>
      tpu.vector_store %arg8[%c0_46, %c0_47, %c0_48], %61 {strides = array<i32>} : memref<1x8x32xf32, #tpu.memory_space<vmem>>, vector<1x8x32xf32>,
    } else {
    }
    return
  }
  func.func @transform_0(%arg0: i32, %arg1: i32, %arg2: i32) -> (i32, i32, i32, i32) {
    %c0_i32 = arith.constant 0 : i32
    %c0_i32_0 = arith.constant 0 : i32
    %c0_i32_1 = arith.constant 0 : i32
    return %arg0, %c0_i32, %arg1, %c0_i32_0 : i32, i32, i32, i32
  }
  func.func @transform_1(%arg0: i32, %arg1: i32, %arg2: i32) -> (i32, i32, i32, i32) {
    %c0_i32 = arith.constant 0 : i32
    %c0_i32_0 = arith.constant 0 : i32
    %c0_i32_1 = arith.constant 0 : i32
    return %arg0, %c0_i32, %arg2, %c0_i32_0 : i32, i32, i32, i32
  }
  func.func @transform_2(%arg0: i32, %arg1: i32, %arg2: i32) -> (i32, i32, i32, i32) {
    %c0_i32 = arith.constant 0 : i32
    %c0_i32_0 = arith.constant 0 : i32
    %c0_i32_1 = arith.constant 0 : i32
    return %arg0, %c0_i32, %arg2, %c0_i32_0 : i32, i32, i32, i32
  }
  func.func @transform_3(%arg0: i32, %arg1: i32, %arg2: i32) -> (i32, i32) {
    %c0_i32 = arith.constant 0 : i32
    %c0_i32_0 = arith.constant 0 : i32
    %c0_i32_1 = arith.constant 0 : i32
    return %c0_i32, %c0_i32_0 : i32, i32
  }
  func.func @transform_4(%arg0: i32, %arg1: i32, %arg2: i32) -> (i32, i32) {
    %c0_i32 = arith.constant 0 : i32
    %c0_i32_0 = arith.constant 0 : i32
    %c0_i32_1 = arith.constant 0 : i32
    return %c0_i32, %c0_i32_0 : i32, i32
  }
  func.func @transform_5(%arg0: i32, %arg1: i32, %arg2: i32) -> (i32, i32, i32) {
    %c0_i32 = arith.constant 0 : i32
    %c0_i32_0 = arith.constant 0 : i32
    return %arg0, %arg1, %c0_i32 : i32, i32, i32
  }
}

module attributes {stable_mosaic.version = 11 : i64} {
  func.func @_qkv_proj_kernel(%arg0: i32, %arg1: i32, %arg2: i32, %arg3: memref<1x8x32xbf16, #tpu.memory_space<vmem>>, %arg4: memref<32x96xbf16, #tpu.memory_space<vmem>>, %arg5: memref<1x8xf32, #tpu.memory_space<vmem>>, %arg6: memref<1x8xf32, #tpu.memory_space<vmem>>, %arg7: memref<1x4x8x8xbf16, #tpu.memory_space<vmem>>, %arg8: memref<1x4x8x8xbf16, #tpu.memory_space<vmem>>, %arg9: memref<1x4x8x8xbf16, #tpu.memory_space<vmem>>, %arg10: memref<8x96xf32, #tpu.memory_space<vmem>>) attributes {dimension_semantics = [#tpu.dimension_semantics<parallel>, #tpu.dimension_semantics<parallel>, #tpu.dimension_semantics<arbitrary>], iteration_bounds = array<i64: 2, 1, 1>, scalar_prefetch = 0 : i64, scratch_operands = 1 : i64, tpu.core_type = #tpu.core_type<tc>, window_params = [{transform_indices = @transform_0, window_bounds = array<i64: 1, 8, 32>}, {transform_indices = @transform_1, window_bounds = array<i64: 32, 96>}, {pipeline_mode = #tpu.pipeline_mode<synchronous>, transform_indices = @transform_2, window_bounds = array<i64: 1, 8>}, {pipeline_mode = #tpu.pipeline_mode<synchronous>, transform_indices = @transform_3, window_bounds = array<i64: 1, 8>}, {transform_indices = @transform_4, window_bounds = array<i64: 1, 4, 8, 8>}, {transform_indices = @transform_5, window_bounds = array<i64: 1, 4, 8, 8>}, {transform_indices = @transform_6, window_bounds = array<i64: 1, 4, 8, 8>}]} {
    %c0_i32 = arith.constant 0 : i32
    %0 = arith.cmpi eq, %arg2, %c0_i32 : i32
    %1 = arith.extui %0 : i1 to i32
    %c0_i32_0 = arith.constant 0 : i32
    %2 = arith.cmpi ne, %1, %c0_i32_0 : i32
    scf.if %2 {
      %cst_11 = arith.constant 0.000000e+00 : f32
      %13 = vector.broadcast %cst_11 : f32 to vector<8x96xf32>
      %c0_12 = arith.constant 0 : index
      %c0_13 = arith.constant 0 : index
      %14 = vector.load %arg10[%c0_12, %c0_13] : memref<8x96xf32, #tpu.memory_space<vmem>>, vector<8x96xf32>
      tpu.vector_store %arg10[%c0_12, %c0_13], %13 {strides = array<i32>} : memref<8x96xf32, #tpu.memory_space<vmem>>, vector<8x96xf32>,
    } else {
    }
    %c0 = arith.constant 0 : index
    %c0_1 = arith.constant 0 : index
    %3 = vector.load %arg10[%c0, %c0_1] : memref<8x96xf32, #tpu.memory_space<vmem>>, vector<8x96xf32>
    %c0_2 = arith.constant 0 : index
    %c0_3 = arith.constant 0 : index
    %c0_4 = arith.constant 0 : index
    %4 = vector.load %arg3[%c0_2, %c0_3, %c0_4] : memref<1x8x32xbf16, #tpu.memory_space<vmem>>, vector<1x8x32xbf16>
    %5 = vector.shape_cast %4 : vector<1x8x32xbf16> to vector<8x32xbf16>
    %c0_5 = arith.constant 0 : index
    %c0_6 = arith.constant 0 : index
    %6 = vector.load %arg4[%c0_5, %c0_6] : memref<32x96xbf16, #tpu.memory_space<vmem>>, vector<32x96xbf16>
    %cst = arith.constant dense<0.000000e+00> : vector<8x96xf32>
    %7 = tpu.matmul %5, %6, %cst {dimension_numbers = #tpu.dot_dimension_numbers<[1], [0], [0], [1], [0, 0, 1, 1], [], []>} : vector<8x32xbf16>, vector<32x96xbf16>, vector<8x96xf32> -> vector<8x96xf32>
    %8 = arith.addf %3, %7 : vector<8x96xf32>
    %c0_7 = arith.constant 0 : index
    %c0_8 = arith.constant 0 : index
    %9 = vector.load %arg10[%c0_7, %c0_8] : memref<8x96xf32, #tpu.memory_space<vmem>>, vector<8x96xf32>
    tpu.vector_store %arg10[%c0_7, %c0_8], %8 {strides = array<i32>} : memref<8x96xf32, #tpu.memory_space<vmem>>, vector<8x96xf32>,
    %c0_i32_9 = arith.constant 0 : i32
    %10 = arith.cmpi eq, %arg2, %c0_i32_9 : i32
    %11 = arith.extui %10 : i1 to i32
    %c0_i32_10 = arith.constant 0 : i32
    %12 = arith.cmpi ne, %11, %c0_i32_10 : i32
    scf.if %12 {
      %c0_11 = arith.constant 0 : index
      %c0_12 = arith.constant 0 : index
      %13 = vector.load %arg5[%c0_11, %c0_12] : memref<1x8xf32, #tpu.memory_space<vmem>>, vector<1x8xf32>
      %c0_13 = arith.constant 0 : index
      %c0_14 = arith.constant 0 : index
      %14 = vector.load %arg6[%c0_13, %c0_14] : memref<1x8xf32, #tpu.memory_space<vmem>>, vector<1x8xf32>
      %c0_15 = arith.constant 0 : index
      %c0_16 = arith.constant 0 : index
      %15 = vector.load %arg10[%c0_15, %c0_16] : memref<8x96xf32, #tpu.memory_space<vmem>>, vector<8x8xf32>
      %c0_17 = arith.constant 0 : index
      %c32 = arith.constant 32 : index
      %16 = vector.load %arg10[%c0_17, %c32] : memref<8x96xf32, #tpu.memory_space<vmem>>, vector<8x8xf32>
      %c0_18 = arith.constant 0 : index
      %c64 = arith.constant 64 : index
      %17 = vector.load %arg10[%c0_18, %c64] : memref<8x96xf32, #tpu.memory_space<vmem>>, vector<8x8xf32>
      %18 = arith.mulf %15, %15 : vector<8x8xf32>
      %cst_19 = arith.constant dense<0.000000e+00> : vector<8xf32>
      %19 = vector.multi_reduction <add>, %18, %cst_19 [1] : vector<8x8xf32> to vector<8xf32>
      %20 = vector.shape_cast %19 : vector<8xf32> to vector<8x1xf32>
      %cst_20 = arith.constant 8.000000e+00 : f32
      %21 = vector.broadcast %cst_20 : f32 to vector<8x1xf32>
      %22 = arith.divf %20, %21 : vector<8x1xf32>
      %cst_21 = arith.constant 9.99999997E-7 : f32
      %23 = vector.broadcast %cst_21 : f32 to vector<8x1xf32>
      %24 = arith.addf %22, %23 : vector<8x1xf32>
      %25 = math.rsqrt %24 : vector<8x1xf32>
      %26 = vector.broadcast %25 : vector<8x1xf32> to vector<8x8xf32>
      %27 = arith.mulf %15, %26 : vector<8x8xf32>
      %28 = vector.broadcast %13 : vector<1x8xf32> to vector<8x8xf32>
      %29 = arith.mulf %27, %28 : vector<8x8xf32>
      %30 = arith.mulf %16, %16 : vector<8x8xf32>
      %cst_22 = arith.constant dense<0.000000e+00> : vector<8xf32>
      %31 = vector.multi_reduction <add>, %30, %cst_22 [1] : vector<8x8xf32> to vector<8xf32>
      %32 = vector.shape_cast %31 : vector<8xf32> to vector<8x1xf32>
      %cst_23 = arith.constant 8.000000e+00 : f32
      %33 = vector.broadcast %cst_23 : f32 to vector<8x1xf32>
      %34 = arith.divf %32, %33 : vector<8x1xf32>
      %cst_24 = arith.constant 9.99999997E-7 : f32
      %35 = vector.broadcast %cst_24 : f32 to vector<8x1xf32>
      %36 = arith.addf %34, %35 : vector<8x1xf32>
      %37 = math.rsqrt %36 : vector<8x1xf32>
      %38 = vector.broadcast %37 : vector<8x1xf32> to vector<8x8xf32>
      %39 = arith.mulf %16, %38 : vector<8x8xf32>
      %40 = vector.broadcast %14 : vector<1x8xf32> to vector<8x8xf32>
      %41 = arith.mulf %39, %40 : vector<8x8xf32>
      %42 = arith.truncf %29 : vector<8x8xf32> to vector<8x8xbf16>
      %c0_25 = arith.constant 0 : index
      %c0_26 = arith.constant 0 : index
      %c0_27 = arith.constant 0 : index
      %c0_28 = arith.constant 0 : index
      %43 = vector.load %arg7[%c0_25, %c0_26, %c0_27, %c0_28] : memref<1x4x8x8xbf16, #tpu.memory_space<vmem>>, vector<1x1x8x8xbf16>
      %44 = vector.shape_cast %43 : vector<1x1x8x8xbf16> to vector<8x8xbf16>
      %45 = vector.shape_cast %42 : vector<8x8xbf16> to vector<1x1x8x8xbf16>
      tpu.vector_store %arg7[%c0_25, %c0_26, %c0_27, %c0_28], %45 {strides = array<i32>} : memref<1x4x8x8xbf16, #tpu.memory_space<vmem>>, vector<1x1x8x8xbf16>,
      %46 = arith.truncf %41 : vector<8x8xf32> to vector<8x8xbf16>
      %c0_29 = arith.constant 0 : index
      %c0_30 = arith.constant 0 : index
      %c0_31 = arith.constant 0 : index
      %c0_32 = arith.constant 0 : index
      %47 = vector.load %arg8[%c0_29, %c0_30, %c0_31, %c0_32] : memref<1x4x8x8xbf16, #tpu.memory_space<vmem>>, vector<1x1x8x8xbf16>
      %48 = vector.shape_cast %47 : vector<1x1x8x8xbf16> to vector<8x8xbf16>
      %49 = vector.shape_cast %46 : vector<8x8xbf16> to vector<1x1x8x8xbf16>
      tpu.vector_store %arg8[%c0_29, %c0_30, %c0_31, %c0_32], %49 {strides = array<i32>} : memref<1x4x8x8xbf16, #tpu.memory_space<vmem>>, vector<1x1x8x8xbf16>,
      %50 = arith.truncf %17 : vector<8x8xf32> to vector<8x8xbf16>
      %c0_33 = arith.constant 0 : index
      %c0_34 = arith.constant 0 : index
      %c0_35 = arith.constant 0 : index
      %c0_36 = arith.constant 0 : index
      %51 = vector.load %arg9[%c0_33, %c0_34, %c0_35, %c0_36] : memref<1x4x8x8xbf16, #tpu.memory_space<vmem>>, vector<1x1x8x8xbf16>
      %52 = vector.shape_cast %51 : vector<1x1x8x8xbf16> to vector<8x8xbf16>
      %53 = vector.shape_cast %50 : vector<8x8xbf16> to vector<1x1x8x8xbf16>
      tpu.vector_store %arg9[%c0_33, %c0_34, %c0_35, %c0_36], %53 {strides = array<i32>} : memref<1x4x8x8xbf16, #tpu.memory_space<vmem>>, vector<1x1x8x8xbf16>,
      %c0_37 = arith.constant 0 : index
      %c8 = arith.constant 8 : index
      %54 = vector.load %arg10[%c0_37, %c8] : memref<8x96xf32, #tpu.memory_space<vmem>>, vector<8x8xf32>
      %c0_38 = arith.constant 0 : index
      %c40 = arith.constant 40 : index
      %55 = vector.load %arg10[%c0_38, %c40] : memref<8x96xf32, #tpu.memory_space<vmem>>, vector<8x8xf32>
      %c0_39 = arith.constant 0 : index
      %c72 = arith.constant 72 : index
      %56 = vector.load %arg10[%c0_39, %c72] : memref<8x96xf32, #tpu.memory_space<vmem>>, vector<8x8xf32>
      %57 = arith.mulf %54, %54 : vector<8x8xf32>
      %cst_40 = arith.constant dense<0.000000e+00> : vector<8xf32>
      %58 = vector.multi_reduction <add>, %57, %cst_40 [1] : vector<8x8xf32> to vector<8xf32>
      %59 = vector.shape_cast %58 : vector<8xf32> to vector<8x1xf32>
      %cst_41 = arith.constant 8.000000e+00 : f32
      %60 = vector.broadcast %cst_41 : f32 to vector<8x1xf32>
      %61 = arith.divf %59, %60 : vector<8x1xf32>
      %cst_42 = arith.constant 9.99999997E-7 : f32
      %62 = vector.broadcast %cst_42 : f32 to vector<8x1xf32>
      %63 = arith.addf %61, %62 : vector<8x1xf32>
      %64 = math.rsqrt %63 : vector<8x1xf32>
      %65 = vector.broadcast %64 : vector<8x1xf32> to vector<8x8xf32>
      %66 = arith.mulf %54, %65 : vector<8x8xf32>
      %67 = vector.broadcast %13 : vector<1x8xf32> to vector<8x8xf32>
      %68 = arith.mulf %66, %67 : vector<8x8xf32>
      %69 = arith.mulf %55, %55 : vector<8x8xf32>
      %cst_43 = arith.constant dense<0.000000e+00> : vector<8xf32>
      %70 = vector.multi_reduction <add>, %69, %cst_43 [1] : vector<8x8xf32> to vector<8xf32>
      %71 = vector.shape_cast %70 : vector<8xf32> to vector<8x1xf32>
      %cst_44 = arith.constant 8.000000e+00 : f32
      %72 = vector.broadcast %cst_44 : f32 to vector<8x1xf32>
      %73 = arith.divf %71, %72 : vector<8x1xf32>
      %cst_45 = arith.constant 9.99999997E-7 : f32
      %74 = vector.broadcast %cst_45 : f32 to vector<8x1xf32>
      %75 = arith.addf %73, %74 : vector<8x1xf32>
      %76 = math.rsqrt %75 : vector<8x1xf32>
      %77 = vector.broadcast %76 : vector<8x1xf32> to vector<8x8xf32>
      %78 = arith.mulf %55, %77 : vector<8x8xf32>
      %79 = vector.broadcast %14 : vector<1x8xf32> to vector<8x8xf32>
      %80 = arith.mulf %78, %79 : vector<8x8xf32>
      %81 = arith.truncf %68 : vector<8x8xf32> to vector<8x8xbf16>
      %c0_46 = arith.constant 0 : index
      %c1 = arith.constant 1 : index
      %c0_47 = arith.constant 0 : index
      %c0_48 = arith.constant 0 : index
      %82 = vector.load %arg7[%c0_46, %c1, %c0_47, %c0_48] : memref<1x4x8x8xbf16, #tpu.memory_space<vmem>>, vector<1x1x8x8xbf16>
      %83 = vector.shape_cast %82 : vector<1x1x8x8xbf16> to vector<8x8xbf16>
      %84 = vector.shape_cast %81 : vector<8x8xbf16> to vector<1x1x8x8xbf16>
      tpu.vector_store %arg7[%c0_46, %c1, %c0_47, %c0_48], %84 {strides = array<i32>} : memref<1x4x8x8xbf16, #tpu.memory_space<vmem>>, vector<1x1x8x8xbf16>,
      %85 = arith.truncf %80 : vector<8x8xf32> to vector<8x8xbf16>
      %c0_49 = arith.constant 0 : index
      %c1_50 = arith.constant 1 : index
      %c0_51 = arith.constant 0 : index
      %c0_52 = arith.constant 0 : index
      %86 = vector.load %arg8[%c0_49, %c1_50, %c0_51, %c0_52] : memref<1x4x8x8xbf16, #tpu.memory_space<vmem>>, vector<1x1x8x8xbf16>
      %87 = vector.shape_cast %86 : vector<1x1x8x8xbf16> to vector<8x8xbf16>
      %88 = vector.shape_cast %85 : vector<8x8xbf16> to vector<1x1x8x8xbf16>
      tpu.vector_store %arg8[%c0_49, %c1_50, %c0_51, %c0_52], %88 {strides = array<i32>} : memref<1x4x8x8xbf16, #tpu.memory_space<vmem>>, vector<1x1x8x8xbf16>,
      %89 = arith.truncf %56 : vector<8x8xf32> to vector<8x8xbf16>
      %c0_53 = arith.constant 0 : index
      %c1_54 = arith.constant 1 : index
      %c0_55 = arith.constant 0 : index
      %c0_56 = arith.constant 0 : index
      %90 = vector.load %arg9[%c0_53, %c1_54, %c0_55, %c0_56] : memref<1x4x8x8xbf16, #tpu.memory_space<vmem>>, vector<1x1x8x8xbf16>
      %91 = vector.shape_cast %90 : vector<1x1x8x8xbf16> to vector<8x8xbf16>
      %92 = vector.shape_cast %89 : vector<8x8xbf16> to vector<1x1x8x8xbf16>
      tpu.vector_store %arg9[%c0_53, %c1_54, %c0_55, %c0_56], %92 {strides = array<i32>} : memref<1x4x8x8xbf16, #tpu.memory_space<vmem>>, vector<1x1x8x8xbf16>,
      %c0_57 = arith.constant 0 : index
      %c16 = arith.constant 16 : index
      %93 = vector.load %arg10[%c0_57, %c16] : memref<8x96xf32, #tpu.memory_space<vmem>>, vector<8x8xf32>
      %c0_58 = arith.constant 0 : index
      %c48 = arith.constant 48 : index
      %94 = vector.load %arg10[%c0_58, %c48] : memref<8x96xf32, #tpu.memory_space<vmem>>, vector<8x8xf32>
      %c0_59 = arith.constant 0 : index
      %c80 = arith.constant 80 : index
      %95 = vector.load %arg10[%c0_59, %c80] : memref<8x96xf32, #tpu.memory_space<vmem>>, vector<8x8xf32>
      %96 = arith.mulf %93, %93 : vector<8x8xf32>
      %cst_60 = arith.constant dense<0.000000e+00> : vector<8xf32>
      %97 = vector.multi_reduction <add>, %96, %cst_60 [1] : vector<8x8xf32> to vector<8xf32>
      %98 = vector.shape_cast %97 : vector<8xf32> to vector<8x1xf32>
      %cst_61 = arith.constant 8.000000e+00 : f32
      %99 = vector.broadcast %cst_61 : f32 to vector<8x1xf32>
      %100 = arith.divf %98, %99 : vector<8x1xf32>
      %cst_62 = arith.constant 9.99999997E-7 : f32
      %101 = vector.broadcast %cst_62 : f32 to vector<8x1xf32>
      %102 = arith.addf %100, %101 : vector<8x1xf32>
      %103 = math.rsqrt %102 : vector<8x1xf32>
      %104 = vector.broadcast %103 : vector<8x1xf32> to vector<8x8xf32>
      %105 = arith.mulf %93, %104 : vector<8x8xf32>
      %106 = vector.broadcast %13 : vector<1x8xf32> to vector<8x8xf32>
      %107 = arith.mulf %105, %106 : vector<8x8xf32>
      %108 = arith.mulf %94, %94 : vector<8x8xf32>
      %cst_63 = arith.constant dense<0.000000e+00> : vector<8xf32>
      %109 = vector.multi_reduction <add>, %108, %cst_63 [1] : vector<8x8xf32> to vector<8xf32>
      %110 = vector.shape_cast %109 : vector<8xf32> to vector<8x1xf32>
      %cst_64 = arith.constant 8.000000e+00 : f32
      %111 = vector.broadcast %cst_64 : f32 to vector<8x1xf32>
      %112 = arith.divf %110, %111 : vector<8x1xf32>
      %cst_65 = arith.constant 9.99999997E-7 : f32
      %113 = vector.broadcast %cst_65 : f32 to vector<8x1xf32>
      %114 = arith.addf %112, %113 : vector<8x1xf32>
      %115 = math.rsqrt %114 : vector<8x1xf32>
      %116 = vector.broadcast %115 : vector<8x1xf32> to vector<8x8xf32>
      %117 = arith.mulf %94, %116 : vector<8x8xf32>
      %118 = vector.broadcast %14 : vector<1x8xf32> to vector<8x8xf32>
      %119 = arith.mulf %117, %118 : vector<8x8xf32>
      %120 = arith.truncf %107 : vector<8x8xf32> to vector<8x8xbf16>
      %c0_66 = arith.constant 0 : index
      %c2 = arith.constant 2 : index
      %c0_67 = arith.constant 0 : index
      %c0_68 = arith.constant 0 : index
      %121 = vector.load %arg7[%c0_66, %c2, %c0_67, %c0_68] : memref<1x4x8x8xbf16, #tpu.memory_space<vmem>>, vector<1x1x8x8xbf16>
      %122 = vector.shape_cast %121 : vector<1x1x8x8xbf16> to vector<8x8xbf16>
      %123 = vector.shape_cast %120 : vector<8x8xbf16> to vector<1x1x8x8xbf16>
      tpu.vector_store %arg7[%c0_66, %c2, %c0_67, %c0_68], %123 {strides = array<i32>} : memref<1x4x8x8xbf16, #tpu.memory_space<vmem>>, vector<1x1x8x8xbf16>,
      %124 = arith.truncf %119 : vector<8x8xf32> to vector<8x8xbf16>
      %c0_69 = arith.constant 0 : index
      %c2_70 = arith.constant 2 : index
      %c0_71 = arith.constant 0 : index
      %c0_72 = arith.constant 0 : index
      %125 = vector.load %arg8[%c0_69, %c2_70, %c0_71, %c0_72] : memref<1x4x8x8xbf16, #tpu.memory_space<vmem>>, vector<1x1x8x8xbf16>
      %126 = vector.shape_cast %125 : vector<1x1x8x8xbf16> to vector<8x8xbf16>
      %127 = vector.shape_cast %124 : vector<8x8xbf16> to vector<1x1x8x8xbf16>
      tpu.vector_store %arg8[%c0_69, %c2_70, %c0_71, %c0_72], %127 {strides = array<i32>} : memref<1x4x8x8xbf16, #tpu.memory_space<vmem>>, vector<1x1x8x8xbf16>,
      %128 = arith.truncf %95 : vector<8x8xf32> to vector<8x8xbf16>
      %c0_73 = arith.constant 0 : index
      %c2_74 = arith.constant 2 : index
      %c0_75 = arith.constant 0 : index
      %c0_76 = arith.constant 0 : index
      %129 = vector.load %arg9[%c0_73, %c2_74, %c0_75, %c0_76] : memref<1x4x8x8xbf16, #tpu.memory_space<vmem>>, vector<1x1x8x8xbf16>
      %130 = vector.shape_cast %129 : vector<1x1x8x8xbf16> to vector<8x8xbf16>
      %131 = vector.shape_cast %128 : vector<8x8xbf16> to vector<1x1x8x8xbf16>
      tpu.vector_store %arg9[%c0_73, %c2_74, %c0_75, %c0_76], %131 {strides = array<i32>} : memref<1x4x8x8xbf16, #tpu.memory_space<vmem>>, vector<1x1x8x8xbf16>,
      %c0_77 = arith.constant 0 : index
      %c24 = arith.constant 24 : index
      %132 = vector.load %arg10[%c0_77, %c24] : memref<8x96xf32, #tpu.memory_space<vmem>>, vector<8x8xf32>
      %c0_78 = arith.constant 0 : index
      %c56 = arith.constant 56 : index
      %133 = vector.load %arg10[%c0_78, %c56] : memref<8x96xf32, #tpu.memory_space<vmem>>, vector<8x8xf32>
      %c0_79 = arith.constant 0 : index
      %c88 = arith.constant 88 : index
      %134 = vector.load %arg10[%c0_79, %c88] : memref<8x96xf32, #tpu.memory_space<vmem>>, vector<8x8xf32>
      %135 = arith.mulf %132, %132 : vector<8x8xf32>
      %cst_80 = arith.constant dense<0.000000e+00> : vector<8xf32>
      %136 = vector.multi_reduction <add>, %135, %cst_80 [1] : vector<8x8xf32> to vector<8xf32>
      %137 = vector.shape_cast %136 : vector<8xf32> to vector<8x1xf32>
      %cst_81 = arith.constant 8.000000e+00 : f32
      %138 = vector.broadcast %cst_81 : f32 to vector<8x1xf32>
      %139 = arith.divf %137, %138 : vector<8x1xf32>
      %cst_82 = arith.constant 9.99999997E-7 : f32
      %140 = vector.broadcast %cst_82 : f32 to vector<8x1xf32>
      %141 = arith.addf %139, %140 : vector<8x1xf32>
      %142 = math.rsqrt %141 : vector<8x1xf32>
      %143 = vector.broadcast %142 : vector<8x1xf32> to vector<8x8xf32>
      %144 = arith.mulf %132, %143 : vector<8x8xf32>
      %145 = vector.broadcast %13 : vector<1x8xf32> to vector<8x8xf32>
      %146 = arith.mulf %144, %145 : vector<8x8xf32>
      %147 = arith.mulf %133, %133 : vector<8x8xf32>
      %cst_83 = arith.constant dense<0.000000e+00> : vector<8xf32>
      %148 = vector.multi_reduction <add>, %147, %cst_83 [1] : vector<8x8xf32> to vector<8xf32>
      %149 = vector.shape_cast %148 : vector<8xf32> to vector<8x1xf32>
      %cst_84 = arith.constant 8.000000e+00 : f32
      %150 = vector.broadcast %cst_84 : f32 to vector<8x1xf32>
      %151 = arith.divf %149, %150 : vector<8x1xf32>
      %cst_85 = arith.constant 9.99999997E-7 : f32
      %152 = vector.broadcast %cst_85 : f32 to vector<8x1xf32>
      %153 = arith.addf %151, %152 : vector<8x1xf32>
      %154 = math.rsqrt %153 : vector<8x1xf32>
      %155 = vector.broadcast %154 : vector<8x1xf32> to vector<8x8xf32>
      %156 = arith.mulf %133, %155 : vector<8x8xf32>
      %157 = vector.broadcast %14 : vector<1x8xf32> to vector<8x8xf32>
      %158 = arith.mulf %156, %157 : vector<8x8xf32>
      %159 = arith.truncf %146 : vector<8x8xf32> to vector<8x8xbf16>
      %c0_86 = arith.constant 0 : index
      %c3 = arith.constant 3 : index
      %c0_87 = arith.constant 0 : index
      %c0_88 = arith.constant 0 : index
      %160 = vector.load %arg7[%c0_86, %c3, %c0_87, %c0_88] : memref<1x4x8x8xbf16, #tpu.memory_space<vmem>>, vector<1x1x8x8xbf16>
      %161 = vector.shape_cast %160 : vector<1x1x8x8xbf16> to vector<8x8xbf16>
      %162 = vector.shape_cast %159 : vector<8x8xbf16> to vector<1x1x8x8xbf16>
      tpu.vector_store %arg7[%c0_86, %c3, %c0_87, %c0_88], %162 {strides = array<i32>} : memref<1x4x8x8xbf16, #tpu.memory_space<vmem>>, vector<1x1x8x8xbf16>,
      %163 = arith.truncf %158 : vector<8x8xf32> to vector<8x8xbf16>
      %c0_89 = arith.constant 0 : index
      %c3_90 = arith.constant 3 : index
      %c0_91 = arith.constant 0 : index
      %c0_92 = arith.constant 0 : index
      %164 = vector.load %arg8[%c0_89, %c3_90, %c0_91, %c0_92] : memref<1x4x8x8xbf16, #tpu.memory_space<vmem>>, vector<1x1x8x8xbf16>
      %165 = vector.shape_cast %164 : vector<1x1x8x8xbf16> to vector<8x8xbf16>
      %166 = vector.shape_cast %163 : vector<8x8xbf16> to vector<1x1x8x8xbf16>
      tpu.vector_store %arg8[%c0_89, %c3_90, %c0_91, %c0_92], %166 {strides = array<i32>} : memref<1x4x8x8xbf16, #tpu.memory_space<vmem>>, vector<1x1x8x8xbf16>,
      %167 = arith.truncf %134 : vector<8x8xf32> to vector<8x8xbf16>
      %c0_93 = arith.constant 0 : index
      %c3_94 = arith.constant 3 : index
      %c0_95 = arith.constant 0 : index
      %c0_96 = arith.constant 0 : index
      %168 = vector.load %arg9[%c0_93, %c3_94, %c0_95, %c0_96] : memref<1x4x8x8xbf16, #tpu.memory_space<vmem>>, vector<1x1x8x8xbf16>
      %169 = vector.shape_cast %168 : vector<1x1x8x8xbf16> to vector<8x8xbf16>
      %170 = vector.shape_cast %167 : vector<8x8xbf16> to vector<1x1x8x8xbf16>
      tpu.vector_store %arg9[%c0_93, %c3_94, %c0_95, %c0_96], %170 {strides = array<i32>} : memref<1x4x8x8xbf16, #tpu.memory_space<vmem>>, vector<1x1x8x8xbf16>,
    } else {
    }
    return
  }
  func.func @transform_0(%arg0: i32, %arg1: i32, %arg2: i32) -> (i32, i32, i32) {
    %c0_i32 = arith.constant 0 : i32
    return %arg0, %arg1, %arg2 : i32, i32, i32
  }
  func.func @transform_1(%arg0: i32, %arg1: i32, %arg2: i32) -> (i32, i32) {
    %c0_i32 = arith.constant 0 : i32
    %c0_i32_0 = arith.constant 0 : i32
    return %arg2, %c0_i32 : i32, i32
  }
  func.func @transform_2(%arg0: i32, %arg1: i32, %arg2: i32) -> (i32, i32) {
    %c0_i32 = arith.constant 0 : i32
    %c0_i32_0 = arith.constant 0 : i32
    %c0_i32_1 = arith.constant 0 : i32
    return %c0_i32, %c0_i32_0 : i32, i32
  }
  func.func @transform_3(%arg0: i32, %arg1: i32, %arg2: i32) -> (i32, i32) {
    %c0_i32 = arith.constant 0 : i32
    %c0_i32_0 = arith.constant 0 : i32
    %c0_i32_1 = arith.constant 0 : i32
    return %c0_i32, %c0_i32_0 : i32, i32
  }
  func.func @transform_4(%arg0: i32, %arg1: i32, %arg2: i32) -> (i32, i32, i32, i32) {
    %c0_i32 = arith.constant 0 : i32
    %c0_i32_0 = arith.constant 0 : i32
    %c0_i32_1 = arith.constant 0 : i32
    return %arg0, %c0_i32, %arg1, %c0_i32_0 : i32, i32, i32, i32
  }
  func.func @transform_5(%arg0: i32, %arg1: i32, %arg2: i32) -> (i32, i32, i32, i32) {
    %c0_i32 = arith.constant 0 : i32
    %c0_i32_0 = arith.constant 0 : i32
    %c0_i32_1 = arith.constant 0 : i32
    return %arg0, %c0_i32, %arg1, %c0_i32_0 : i32, i32, i32, i32
  }
  func.func @transform_6(%arg0: i32, %arg1: i32, %arg2: i32) -> (i32, i32, i32, i32) {
    %c0_i32 = arith.constant 0 : i32
    %c0_i32_0 = arith.constant 0 : i32
    %c0_i32_1 = arith.constant 0 : i32
    return %arg0, %c0_i32, %arg1, %c0_i32_0 : i32, i32, i32, i32
  }
}

</mosaic_0001>

<bundles_post_ra>
// kernel: _attn_forward.2
= control target key start
LH: loop header
LB: loop body
LE: loop exit
PB: predicated region body
PF: predicated region fallthrough
CT: control target
= control target key end

     0   :  { %s1063_s21 = smov 0   ;;  %s1065_s22 = smov 0   ;;  %s1234_s0 = inlined_call_operand.vmem [shape: bf16[2,8,32], index: 0, kind: input, shape index: {}]   ;;  %s1235_s1 = inlined_call_operand.vmem [shape: bf16[32,96], index: 1, kind: input, shape index: {}]   ;;  %s1236_s2 = inlined_call_operand.vmem [shape: f32[1,8], index: 2, kind: input, shape index: {}]   ;;  %s1237_s3 = inlined_call_operand.vmem [shape: f32[1,8], index: 3, kind: input, shape index: {}]   ;;  %s1238_s4 = inlined_call_operand.vmem [shape: bf16[2,4,8,8], index: 4, kind: output, shape index: {0}]   ;;  %s1239_s5 = inlined_call_operand.vmem [shape: bf16[2,4,8,8], index: 5, kind: output, shape index: {1}]   ;;  %s1240_s6 = inlined_call_operand.vmem [shape: bf16[2,4,8,8], index: 6, kind: output, shape index: {2}]  }
   0x1   :  { %s1067_s23 = smov 0  }
   0x2 LB: > { %s36_s24 = sadd.s32 1, %s1005_s22  ;;  %p893_p0 = scmp.ge.s32.totalorder %s1009_s23, 1  ;;  %s1009_s23 = sphi %s1067_s23, %s17_s23   ;;  %s1005_s22 = sphi %s1065_s22, %s1244_s22   ;;  %s1001_s21 = sphi %s1063_s21, %s1243_s21  }
   0x3   : > { %p38_p1 = scmp.ge.s32.totalorder %s36_s24, 2  ;;  %p262_p2 = scmp.lt.s32.totalorder %s1009_s23, 3 }
   0x5   : > { %s1246_s24 = smov (%p38_p1, %s36_s24), 0  ;;  %p263_p3 = pnand %p893_p0, %p262_p2 }
   0x6   : > { %p321_p4 = scmp.lt.s32.totalorder (!%p263_p3), %s1001_s21, 1  ;;  %s1011_s9 = smov (!%p263_p3), 32  }
   0x7   : > { %266 = sbr.rel (%p263_p3) target bundleno = 554 (0x22a), region = 36  ;;  %s1013_s11 = smov (!%p263_p3), 8  }
   0x8   : > { %s1014_s15 = smov (!%p263_p3), 40   ;;  %s1015_s16 = smov (!%p263_p3), 16  }
   0x9   : > { %s1016_s17 = smov (!%p263_p3), 88   ;;  %s1017_s18 = smov (!%p263_p3), 64  }
   0xa   : > { %s1018_s19 = smov (!%p263_p3), 96   ;;  %s1019_s20 = smov (!%p263_p3), 80  }
   0xb   : > { %s1020_s25 = smov (!%p263_p3), 120   ;;  %s1021_s26 = smov (!%p263_p3), 112  }
   0xc   : > { %v925_v0 = vld [vmem:[%s1235_s1 + $0x8] sm:$0xff]  ;;  %v1087_v1 = vld [vmem:[%s1237_s3] ss:$0 sm:$0xff]  ;;  %s1248_s21 = smov (!%p321_p4, %s1001_s21), 1  ;;  %vm366_vm0 = vcmask 785408   ;;  %v1012_v4 = vmov 0.0  }
   0xd   : > { %396 = vmatpush.bf16.msra.mxu0 %v925_v0  ;;  %v924_v2 = vld [vmem:[%s1235_s1] sm:$0xff]  ;;  %463 = vrot.lane.b32.xlu1 %v1087_v1, %s1011_s9  ;;  %367 = vst.msk [vmem:[#allocation2] sm:$0xff] %vm366_vm0, %v1012_v4  ;;  %s894_s10 = sshll.u32 %s1248_s21, 2  ;;  %vm386_vm1 = vcmask 261120   ;;  %s1022_s27 = smov 72   ;;  %vm413_vm2 = vcmask 64512  }
   0xe   : > { %v1097_v3 = vld [vmem:[%s1236_s2] ss:$0 sm:$0xff]  ;;  %s330_s14 = scalar_lea.vmem %s1234_s0, %s894_s10  ;;  %s1023_s28 = smov 104   ;;  %vm468_vm3 = vcmask 60416   ;;  %v1024_v33 = vmov 8.0  }
   0xf   : > { %504 = vrot.lane.b32.xlu0 %v1097_v3, %s1013_s11  ;;  %v369_v5 = vld [vmem:[%s330_s14] sm:$0xf]  ;;  %s1128_s29 = sshll.u32 %s1248_s21, 4  ;;  %969 = vrcp.f32 %v1024_v33  ;;  %s1025_s21 = smov 56  }
  0x10   : > { %s1134_s8 = scalar_lea.vmem %s1240_s6, %s1128_s29  ;;  %s1026_s9 = smov 48  }
  0x11   : > { %397 = vmatpush.bf16.msra.mxu0 %v924_v2  ;;  %s1027_s10 = smov 24   ;;  %s1167_s13 = scalar_lea.vmem %s1238_s4, %s1128_s29 }
  0x14   : > { %909 = vmatmul.msk.bf16.vlgmr.msra.gmra.mxu0 %vm386_vm1, %v369_v5  ;;  %v368_v6 = vld [vmem:[#allocation2] sm:$0xff] }
  0x15   : > { %527 = vrot.lane.b32.xlu1 %v1087_v1, %s1014_s15  ;;  %v970_v34 = vpop.eup %969 }
  0x16   : > { %v418_v35 = vmul.f32 8.0, %v970_v34  ;;  %vm422_vm4 = vweird.f32 %v970_v34 }
  0x17   : > { %574 = vrot.lane.b32.xlu0 %v1097_v3, %s1015_s16  ;;  %s352_s16 = scalar_lea.vmem %s1239_s5, %s1128_s29 }
  0x18   : > { %v419_v36 = vsub.f32 1.0, %v418_v35 }
  0x1a   : > { %v420_v37 = vmul.f32 %v970_v34, %v419_v36 }
  0x1c   : > { %v421_v38 = vadd.f32 %v970_v34, %v420_v37 }
  0x1e   : > { %v1158_v39 = vsel %vm422_vm4, %v970_v34, %v421_v38 }
  0x7f   : > { %v1138_v15 = vpop.permute.xlu1 %463 }
  0x81   : > { %v1140_v16 = vpop.permute.xlu0 %504 }
  0x87   : > { %v1143_v19 = vpop.permute.xlu1 %527 }
  0x89   : > { %v1145_v20 = vpop.permute.xlu0 %574 }
  0x91   : > { %v399_v7 = vpop.f32.mrf.mxu0 }
  0x92   : > { %v403_v8 = vadd.f32 %v399_v7, %v368_v6 }
  0x94   : > { %405 = vst.msk [vmem:[#allocation2] sm:$0xff] %vm366_vm0, %v403_v8 }
  0x99   : > { %v401_v9 = vpop.f32.mrf.mxu0 }
  0x9b   : > { %v1110_v10 = vld [vmem:[#allocation2] sm:$0xff] }
  0x9c   : > { %v483_v11 = vmul.f32 %v1110_v10, %v1110_v10  ;;  %v1116_v12 = vpack.c.bf16 %v1110_v10, %v1110_v10 }
  0x9e   : > { %508 = vrot.lane.b32.xlu1 %v483_v11, %s1016_s17  ;;  %478 = vrot.lane.b32.xlu2 %v1116_v12, %s1017_s18  ;;  %v414_v13 = vsel %vm413_vm2, %v483_v11, 0.0 }
  0x9f   : > { %442 = vrot.lane.b32.xlu0 %v483_v11, %s1018_s19 }
  0xa6   : > { %578 = vrot.lane.b32.xlu1 %v483_v11, %s1019_s20  ;;  %485 = vrot.lane.b32.xlu2 %v483_v11, %s1020_s25 }
  0xa7   : > { %555 = vrot.lane.b32.xlu0 %v483_v11, %s1021_s26 }
  0xae   : > { %648 = vrot.lane.b32.xlu1 %v483_v11, %s1022_s27 }
  0xaf   : > { %625 = vrot.lane.b32.xlu0 %v483_v11, %s1023_s28 }
  0xd9   : > { %415 = vadd.xlane.f32.xlu0 %v414_v13 }
  0xf8   : > { %v479_v14 = vpop.permute.xlu2 %478 }
  0xf9   : > { %481 = vst.msk [vmem:[%s1134_s8] sm:$0xf] %vm468_vm3, %v479_v14 }
 0x100   : > { %v486_v17 = vpop.permute.xlu2 %485 }
 0x101   : > { %v488_v18 = vsel %vm413_vm2, %v486_v17, 0.0 }
 0x102   : > { %489 = vadd.xlane.f32.xlu2 %v488_v18 }
 0x110   : > { %v509_v21 = vpop.permute.xlu1 %508 }
 0x111   : > { %v443_v22 = vpop.permute.xlu0 %442  ;;  %v511_v23 = vsel %vm413_vm2, %v509_v21, 0.0 }
 0x112   : > { %v445_v24 = vsel %vm413_vm2, %v443_v22, 0.0  ;;  %512 = vadd.xlane.f32.xlu0 %v511_v23 }
 0x113   : > { %446 = vadd.xlane.f32.xlu1 %v445_v24 }
 0x118   : > { %v579_v25 = vpop.permute.xlu1 %578 }
 0x119   : > { %v556_v26 = vpop.permute.xlu0 %555  ;;  %v581_v27 = vsel %vm413_vm2, %v579_v25, 0.0 }
 0x11a   : > { %582 = vadd.xlane.f32.xlu2 %v581_v27  ;;  %v558_v28 = vsel %vm413_vm2, %v556_v26, 0.0 }
 0x11b   : > { %559 = vadd.xlane.f32.xlu1 %v558_v28 }
 0x120   : > { %v649_v31 = vpop.permute.xlu1 %648 }
 0x121   : > { %v626_v29 = vpop.permute.xlu0 %625  ;;  %v651_v32 = vsel %vm413_vm2, %v649_v31, 0.0 }
 0x122   : > { %v628_v30 = vsel %vm413_vm2, %v626_v29, 0.0 }
 0x123   : > { %629 = vadd.xlane.f32.xlu0 %v628_v30 }
 0x12b   : > { %652 = vadd.xlane.f32.xlu0 %v651_v32 }
 0x132   : > { %667 = vrot.lane.b32.xlu2 %v1087_v1, %s1025_s21 }
 0x134   : > { %597 = vrot.lane.b32.xlu1 %v1087_v1, %s1026_s9 }
 0x13c   : > { %617 = vrot.lane.b32.xlu1 %v1116_v12, %s1026_s9 }
 0x13f   : > { %644 = vrot.lane.b32.xlu0 %v1097_v3, %s1027_s10 }
 0x147   : > { %547 = vrot.lane.b32.xlu0 %v1116_v12, %s1025_s21 }
 0x14c   : > { %v416_v40 = vpop.xlane.xlu0 %415 }
 0x14d   : > { %v424_v41 = vmul.f32 %v1158_v39, %v416_v40 }
 0x14f   : > { %v425_v42 = vadd.f32 1e-06, %v424_v41 }
 0x151   : > { %971 = vrsqrt.f32 %v425_v42  ;;  %vm432_vm6 = vweird.f32 %v425_v42 }
 0x157   : > { %v972_v43 = vpop.eup %971 }
 0x158   : > { %v427_v44 = vmul.f32 %v972_v43, %v425_v42  ;;  %vm433_vm5 = vweird.f32 %v972_v43 }
 0x159   : > { %vm434_vm7 = vmor %vm432_vm6, %vm433_vm5 }
 0x15a   : > { %v428_v45 = vmul.f32 %v972_v43, %v427_v44 }
 0x15c   : > { %v429_v46 = vmul.f32 0.5, %v428_v45 }
 0x15e   : > { %v430_v47 = vsub.f32 1.5, %v429_v46 }
 0x160   : > { %v431_v48 = vmul.f32 %v972_v43, %v430_v47 }
 0x162   : > { %v435_v49 = vsel %vm434_vm7, %v972_v43, %v431_v48 }
 0x163   : > { %v436_v50 = vmul.f32 %v1110_v10, %v435_v49 }
 0x165   : > { %v440_v51 = vmul.f32 %v1097_v3, %v436_v50 }
 0x167   : > { %v467_v52 = vpack.c.bf16 %v440_v51, %v440_v51 }
 0x169   : > { %469 = vst.msk [vmem:[%s1167_s13] sm:$0xf] %vm468_vm3, %v467_v52 }
 0x175   : > { %v490_v53 = vpop.xlane.xlu2 %489 }
 0x176   : > { %v491_v54 = vmul.f32 %v490_v53, %v1158_v39 }
 0x178   : > { %v492_v55 = vadd.f32 1e-06, %v491_v54 }
 0x17a   : > { %973 = vrsqrt.f32 %v492_v55  ;;  %vm499_vm9 = vweird.f32 %v492_v55 }
 0x180   : > { %v974_v56 = vpop.eup %973 }
 0x181   : > { %v494_v57 = vmul.f32 %v974_v56, %v492_v55  ;;  %vm500_vm8 = vweird.f32 %v974_v56 }
 0x182   : > { %vm501_vm10 = vmor %vm499_vm9, %vm500_vm8 }
 0x183   : > { %v495_v58 = vmul.f32 %v974_v56, %v494_v57 }
 0x185   : > { %v496_v59 = vmul.f32 0.5, %v495_v58  ;;  %v513_v60 = vpop.xlane.xlu0 %512 }
 0x186   : > { %v447_v61 = vpop.xlane.xlu1 %446  ;;  %v514_v62 = vmul.f32 %v513_v60, %v1158_v39 }
 0x187   : > { %v497_v63 = vsub.f32 1.5, %v496_v59  ;;  %v448_v0 = vmul.f32 %v447_v61, %v1158_v39 }
 0x188   : > { %v515_v1 = vadd.f32 1e-06, %v514_v62 }
 0x189   : > { %v498_v2 = vmul.f32 %v974_v56, %v497_v63  ;;  %v449_v3 = vadd.f32 1e-06, %v448_v0 }
 0x18a   : > { %975 = vrsqrt.f32 %v515_v1  ;;  %vm522_vm15 = vweird.f32 %v515_v1 }
 0x18b   : > { %977 = vrsqrt.f32 %v449_v3  ;;  %v502_v4 = vsel %vm501_vm10, %v974_v56, %v498_v2  ;;  %vm456_vm12 = vweird.f32 %v449_v3 }
 0x18c   : > { %v503_v5 = vmul.f32 %v502_v4, %v1110_v10 }
 0x18d   : > { %v583_v6 = vpop.xlane.xlu2 %582 }
 0x18e   : > { %v584_v7 = vmul.f32 %v583_v6, %v1158_v39  ;;  %v560_v8 = vpop.xlane.xlu1 %559  ;;  %v507_v9 = vmul.f32 %v1140_v16, %v503_v5 }
 0x18f   : > { %v561_v11 = vmul.f32 %v560_v8, %v1158_v39 }
 0x190   : > { %v976_v13 = vpop.eup %975  ;;  %v585_v14 = vadd.f32 1e-06, %v584_v7  ;;  %v531_v17 = vpack.c.bf16 %v507_v9, %v507_v9 }
 0x191   : > { %v978_v18 = vpop.eup %977  ;;  %v517_v21 = vmul.f32 %v976_v13, %v515_v1  ;;  %v562_v22 = vadd.f32 1e-06, %v561_v11  ;;  %vm523_vm14 = vweird.f32 %v976_v13 }
 0x192   : > { %v451_v23 = vmul.f32 %v978_v18, %v449_v3  ;;  %979 = vrsqrt.f32 %v585_v14  ;;  %533 = vrot.lane.b32.xlu1 %v531_v17, %s1020_s25  ;;  %vm457_vm11 = vweird.f32 %v978_v18  ;;  %vm1181_vm0 = vmor %vm522_vm15, %vm523_vm14  ;;  %vm592_vm4 = vweird.f32 %v585_v14 }
 0x193   : > { %v518_v24 = vmul.f32 %v976_v13, %v517_v21  ;;  %981 = vrsqrt.f32 %v562_v22  ;;  %vm458_vm13 = vmor %vm456_vm12, %vm457_vm11  ;;  %vm569_vm5 = vweird.f32 %v562_v22 }
 0x194   : > { %v452_v25 = vmul.f32 %v978_v18, %v451_v23 }
 0x195   : > { %v519_v26 = vmul.f32 0.5, %v518_v24  ;;  %v668_v24 = vpop.permute.xlu2 %667 }
 0x196   : > { %v453_v27 = vmul.f32 0.5, %v452_v25  ;;  %v630_v28 = vpop.xlane.xlu0 %629 }
 0x197   : > { %v520_v29 = vsub.f32 1.5, %v519_v26  ;;  %v631_v16 = vmul.f32 %v630_v28, %v1158_v39 }
 0x198   : > { %v980_v30 = vpop.eup %979  ;;  %v454_v31 = vsub.f32 1.5, %v453_v27 }
 0x199   : > { %v982_v32 = vpop.eup %981  ;;  %v587_v33 = vmul.f32 %v980_v30, %v585_v14  ;;  %v632_v34 = vadd.f32 1e-06, %v631_v16  ;;  %v521_v37 = vmul.f32 %v976_v13, %v520_v29  ;;  %vm593_vm1 = vweird.f32 %v980_v30 }
 0x19a   : > { %v455_v35 = vmul.f32 %v978_v18, %v454_v31  ;;  %v564_v36 = vmul.f32 %v982_v32, %v562_v22  ;;  %vm570_vm2 = vweird.f32 %v982_v32  ;;  %vm594_vm6 = vmor %vm592_vm4, %vm593_vm1 }
 0x19b   : > { %v588_v38 = vmul.f32 %v980_v30, %v587_v33  ;;  %983 = vrsqrt.f32 %v632_v34  ;;  %v525_v50 = vsel %vm1181_vm0, %v976_v13, %v521_v37  ;;  %vm571_vm7 = vmor %vm569_vm5, %vm570_vm2  ;;  %vm639_vm9 = vweird.f32 %v632_v34 }
 0x19c   : > { %v565_v40 = vmul.f32 %v982_v32, %v564_v36  ;;  %v459_v41 = vsel %vm458_vm13, %v978_v18, %v455_v35  ;;  %v526_v58 = vmul.f32 %v525_v50, %v1110_v10 }
 0x19d   : > { %v589_v42 = vmul.f32 0.5, %v588_v38  ;;  %v460_v43 = vmul.f32 %v1110_v10, %v459_v41 }
 0x19e   : > { %v566_v45 = vmul.f32 0.5, %v565_v40  ;;  %v653_v46 = vpop.xlane.xlu0 %652  ;;  %v530_v0 = vmul.f32 %v1143_v19, %v526_v58 }
 0x19f   : > { %v590_v47 = vsub.f32 1.5, %v589_v42  ;;  %v654_v48 = vmul.f32 %v653_v46, %v1158_v39  ;;  %v466_v49 = vmul.f32 %v1138_v15, %v460_v43 }
 0x1a0   : > { %v567_v51 = vsub.f32 1.5, %v566_v45  ;;  %v538_v8 = vpack.c.bf16 %v530_v0, %v530_v0 }
 0x1a1   : > { %v984_v52 = vpop.eup %983  ;;  %v655_v53 = vadd.f32 1e-06, %v654_v48  ;;  %v470_v54 = vpack.c.bf16 %v466_v49, %v466_v49  ;;  %v591_v55 = vmul.f32 %v980_v30, %v590_v47 }
 0x1a2   : > { %v568_v56 = vmul.f32 %v982_v32, %v567_v51  ;;  %v634_v57 = vmul.f32 %v984_v52, %v632_v34  ;;  %vm640_vm8 = vweird.f32 %v984_v52 }
 0x1a3   : > { %985 = vrsqrt.f32 %v655_v53  ;;  %472 = vrot.lane.b32.xlu2 %v470_v54, %s1018_s19  ;;  %v595_v15 = vsel %vm594_vm6, %v980_v30, %v591_v55  ;;  %vm641_vm10 = vmor %vm639_vm9, %vm640_vm8  ;;  %vm662_vm12 = vweird.f32 %v655_v53 }
 0x1a4   : > { %v635_v39 = vmul.f32 %v984_v52, %v634_v57  ;;  %v596_v59 = vmul.f32 %v595_v15, %v1110_v10  ;;  %v572_v60 = vsel %vm571_vm7, %v982_v32, %v568_v56 }
 0x1a5   : > { %v573_v61 = vmul.f32 %v572_v60, %v1110_v10 }
 0x1a6   : > { %v636_v62 = vmul.f32 0.5, %v635_v39  ;;  %v598_v63 = vpop.permute.xlu1 %597 }
 0x1a7   : > { %v600_v1 = vmul.f32 %v598_v63, %v596_v59  ;;  %v577_v2 = vmul.f32 %v1145_v20, %v573_v61 }
 0x1a8   : > { %v637_v3 = vsub.f32 1.5, %v636_v62 }
 0x1a9   : > { %v986_v4 = vpop.eup %985  ;;  %v608_v5 = vpack.c.bf16 %v600_v1, %v600_v1  ;;  %v601_v6 = vpack.c.bf16 %v577_v2, %v577_v2 }
 0x1aa   : > { %v657_v7 = vmul.f32 %v986_v4, %v655_v53  ;;  %v638_v9 = vmul.f32 %v984_v52, %v637_v3  ;;  %vm663_vm11 = vweird.f32 %v986_v4 }
 0x1ab   : > { %603 = vrot.lane.b32.xlu1 %v601_v6, %s1021_s26  ;;  %610 = vrot.lane.b32.xlu0 %v608_v5, %s1019_s20  ;;  %vm664_vm13 = vmor %vm662_vm12, %vm663_vm11 }
 0x1ac   : > { %v658_v11 = vmul.f32 %v986_v4, %v657_v7  ;;  %540 = vrot.lane.b32.xlu2 %v538_v8, %s1016_s17  ;;  %v642_v19 = vsel %vm641_vm10, %v984_v52, %v638_v9 }
 0x1ad   : > { %v643_v17 = vmul.f32 %v642_v19, %v1110_v10 }
 0x1ae   : > { %v659_v20 = vmul.f32 0.5, %v658_v11  ;;  %v618_v13 = vpop.permute.xlu1 %617 }
 0x1af   : > { %915 = vst.msk [vmem:[%s1134_s8 + $0x8] sm:$0xf] %vm468_vm3, %v618_v13 }
 0x1b0   : > { %v660_v14 = vsub.f32 1.5, %v659_v20 }
 0x1b1   : > { %v645_v18 = vpop.permute.xlu0 %644 }
 0x1b2   : > { %v647_v21 = vmul.f32 %v645_v18, %v643_v17  ;;  %v661_v22 = vmul.f32 %v986_v4, %v660_v14 }
 0x1b3   : > { %687 = vrot.lane.b32.xlu1 %v1116_v12, %s1014_s15 }
 0x1b4   : > { %v671_v23 = vpack.c.bf16 %v647_v21, %v647_v21  ;;  %v665_v25 = vsel %vm664_vm13, %v986_v4, %v661_v22 }
 0x1b5   : > { %v666_v26 = vmul.f32 %v665_v25, %v1110_v10 }
 0x1b6   : > { %673 = vrot.lane.b32.xlu0 %v671_v23, %s1023_s28 }
 0x1b7   : > { %v670_v27 = vmul.f32 %v668_v24, %v666_v26 }
 0x1b9   : > { %v678_v28 = vpack.c.bf16 %v670_v27, %v670_v27  ;;  %v548_v29 = vpop.permute.xlu0 %547 }
 0x1ba   : > { %912 = vst.msk [vmem:[%s1134_s8 + $0x4] sm:$0xf] %vm468_vm3, %v548_v29 }
 0x1bb   : > { %680 = vrot.lane.b32.xlu2 %v678_v28, %s1022_s27 }
 0x1fd   : > { %v473_v12 = vpop.permute.xlu2 %472 }
 0x1fe   : > { %475 = vst.msk [vmem:[%s352_s16] sm:$0xf] %vm468_vm3, %v473_v12 }
 0x204   : > { %v534_v10 = vpop.permute.xlu1 %533 }
 0x205   : > { %910 = vst.msk [vmem:[%s1167_s13 + $0x4] sm:$0xf] %vm468_vm3, %v534_v10 }
 0x206   : > { %v541_v16 = vpop.permute.xlu2 %540 }
 0x207   : > { %911 = vst.msk [vmem:[%s352_s16 + $0x4] sm:$0xf] %vm468_vm3, %v541_v16 }
 0x215   : > { %v681_v30 = vpop.permute.xlu2 %680 }
 0x216   : > { %917 = vst.msk [vmem:[%s352_s16 + $0xc] sm:$0xf] %vm468_vm3, %v681_v30 }
 0x21d   : > { %v604_v31 = vpop.permute.xlu1 %603  ;;  %v611_v32 = vpop.permute.xlu0 %610 }
 0x21e   : > { %913 = vst.msk [vmem:[%s1167_s13 + $0x8] sm:$0xf] %vm468_vm3, %v604_v31 }
 0x21f   : > { %914 = vst.msk [vmem:[%s352_s16 + $0x8] sm:$0xf] %vm468_vm3, %v611_v32 }
 0x225   : > { %v688_v33 = vpop.permute.xlu1 %687 }
 0x226   : > { %918 = vst.msk [vmem:[%s1134_s8 + $0xc] sm:$0xf] %vm468_vm3, %v688_v33 }
 0x228   : > { %v674_v34 = vpop.permute.xlu0 %673 }
 0x229   : > { %916 = vst.msk [vmem:[%s1167_s13 + $0xc] sm:$0xf] %vm468_vm3, %v674_v34 }
 0x22a PF: > { %s17_s23 = sadd.s32 1, %s1009_s23   ;;  %s1243_s21 = smov %s1005_s22 }
 0x22b   : > { %p14_p5 = scmp.ge.s32.totalorder %s17_s23, 4   ;;  %s1244_s22 = smov %s1246_s24 }
 0x22d   :  { %16 = sbr.rel (!%p14_p5) target bundleno = 2 (0x2), region = 110 }

// kernel: _attn_forward.3
= control target key start
LH: loop header
LB: loop body
LE: loop exit
PB: predicated region body
PF: predicated region fallthrough
CT: control target
= control target key end

     0   :  { %10 = vsyncpa [#allocation6], 0  ;;  %s1341_s0 = inlined_call_operand.vmem [shape: bf16[2,4,8,8], index: 0, kind: input, shape index: {}]   ;;  %s1342_s1 = inlined_call_operand.vmem [shape: bf16[2,4,8,8], index: 1, kind: input, shape index: {}]   ;;  %s1343_s2 = inlined_call_operand.vmem [shape: bf16[2,4,8,8], index: 2, kind: input, shape index: {}]   ;;  %s1344_s3 = inlined_call_operand.vmem [shape: bf16[32,32], index: 3, kind: input, shape index: {}]   ;;  %s1345_s4 = inlined_call_operand.vmem [shape: f32[1,32], index: 4, kind: input, shape index: {}]   ;;  %s1346_s5 = inlined_call_operand.hbm [shape: f32[2,8,32], index: 5, kind: output, shape index: {}]  }
   0x1   :  { %12 = vsyncpa [#allocation6 + $0x1], 0  ;;  %s1116_s18 = smov 0   ;;  %s1118_s19 = smov 0  }
   0x2   :  { %s1120_s20 = smov 0   ;;  %s1122_s21 = smov 0  }
   0x3   :  { %s1124_s22 = smov 0   ;;  %s1126_s23 = smov 0  }
   0x4 LB: > { %s873_s24 = sadd.s32 4294967295, %s1078_s23   ;;  %s874_s25 = sadd.s32 4294967294, %s1078_s23   ;;  %s1078_s23 = sphi %s1126_s23, %s18_s23   ;;  %s1074_s22 = sphi %s1124_s22, %s1353_s22   ;;  %s1070_s21 = sphi %s1122_s21, %s1352_s21   ;;  %s1066_s20 = sphi %s1120_s20, %s1351_s20   ;;  %s1062_s19 = sphi %s1118_s19, %s1350_s19   ;;  %s1058_s18 = sphi %s1116_s18, %s1349_s18  }
   0x5   : > { %s37_s26 = sadd.s32 1, %s1074_s22  ;;  %s172_s27 = sadd.s32 1, %s1066_s20 }
   0x6   : > { %p39_p0 = scmp.ge.s32.totalorder %s37_s26, 2  ;;  %p182_p1 = scmp.ne.s32.totalorder %s1066_s20, %s1062_s19 }
   0x7   : > { %p183_p2 = scmp.eq.s32.totalorder %s873_s24, 1  ;;  %p188_p3 = scmp.ne.s32.totalorder %s1062_s19, %s1058_s18 }
   0x8   : > { %s1355_s26 = smov (%p39_p0, %s37_s26), 0  ;;  %p189_p5 = scmp.eq.s32.totalorder %s874_s25, 1 }
   0x9   : > { %p1156_p4 = por %p183_p2, %p182_p1  ;;  %s167_s29 = ssub.s32 %s1074_s22, %s1355_s26 }
   0xa   : > { %p877_p6 = scmp.ge.s32.totalorder %s1078_s23, 1  ;;  %p170_p7 = scmp.eq.s32.totalorder %s167_s29, 0 }
   0xb   : > { %p1163_p8 = por %p189_p5, %p188_p3  ;;  %p246_p9 = scmp.lt.s32.totalorder %s1078_s23, 3 }
   0xc   : > { %s1169_s6 = scalar_select %p170_p7, %s1066_s20, %s172_s27  }
   0xd   : > { %p247_p10 = pnand %p877_p6, %p246_p9 }
   0xe   : > { %p293_p11 = scmp.lt.s32.totalorder (!%p247_p10), %s1070_s21, 1  ;;  %s1083_s24 = smov (!%p247_p10), 24  }
   0xf   : > { %250 = sbr.rel (%p247_p10) target bundleno = 918 (0x396), region = 40  ;;  %s1084_s25 = smov (!%p247_p10), 8  }
  0x10   : > { %s1085_s27 = smov (!%p247_p10), 16   ;;  %s290_s10 = sand.u32 (!%p247_p10), 1, %s1062_s19  }
  0x11   : > { %s878_s12 = sshll.u32 (!%p247_p10), %s290_s10, 3 }
  0x14   : > { %s294_s7 = scalar_select %p293_p11, %s1070_s21, 1  ;;  %vm331_vm0 = vcmask 64512   ;;  %vm322_vm1 = vcmask 7168   ;;  %v1080_v12 = vmov -inf   ;;  %v1081_v25 = vmov 0  }
  0x15   : > { %325 = vst.msk [vmem:[#allocation2 + $0x10] sm:$0xff] %vm322_vm1, %v1080_v12  ;;  %972 = vset.pattern.permute.xlu1 %v1081_v25  ;;  %973 = vset.pattern.permute.xlu2 %v1081_v25  ;;  %v1082_v26 = vmov 0.0   ;;  %vm553_vm2 = vcmask 1043456   ;;  %vm700_vm3 = vcmask 130048   ;;  %vm703_vm4 = vcmask 195584  }
  0x16   : > { %s1173_s8 = sshll.u32 %s294_s7, 4  ;;  %323 = vst.msk [vmem:[#allocation2] sm:$0xff] %vm322_vm1, %v1080_v12  ;;  %974 = vset.pattern.permute.xlu0 %v1081_v25  ;;  %vm726_vm5 = vcmask 261120  }
  0x17   : > { %s308_s11 = scalar_lea.vmem %s1342_s1, %s1173_s8  ;;  %s300_s14 = scalar_lea.vmem %s1341_s0, %s1173_s8  ;;  %324 = vst.msk [vmem:[#allocation2 + $0x8] sm:$0xff] %vm322_vm1, %v1080_v12 }
  0x18   : > { %v342_v0 = vld [vmem:[%s308_s11 + $0x8] sm:$0xf]  ;;  %v343_v1 = vld [vmem:[%s308_s11 + $0xc] sm:$0xf]  ;;  %v341_v4 = vld [vmem:[%s308_s11 + $0x4] sm:$0xf]  ;;  %s316_s17 = scalar_lea.vmem %s1343_s2, %s1173_s8 }
  0x19   : > { %v391_v2 = vsel %vm331_vm0, %v342_v0, 0  ;;  %v410_v3 = vsel %vm331_vm0, %v343_v1, 0  ;;  %v372_v5 = vsel %vm331_vm0, %v341_v4, 0  ;;  %v340_v6 = vld [vmem:[%s308_s11] sm:$0xf]  ;;  %326 = vst.msk [vmem:[#allocation2 + $0x18] sm:$0xff] %vm322_vm1, %v1080_v12 }
  0x1a   : > { %400 = vmatpush.bf16.xpose.msra.mxu2 %v391_v2  ;;  %419 = vmatpush.bf16.xpose.msra.mxu3 %v410_v3  ;;  %v353_v7 = vsel %vm331_vm0, %v340_v6, 0  ;;  %v338_v8 = vld [vmem:[%s300_s14 + $0x8] sm:$0xf]  ;;  %v339_v9 = vld [vmem:[%s300_s14 + $0xc] sm:$0xf]  ;;  %328 = vst.msk [vmem:[#allocation3 + $0x8] sm:$0xff] %vm322_vm1, %v1082_v26 }
  0x1b   : > { %381 = vmatpush.bf16.xpose.msra.mxu1 %v372_v5  ;;  %362 = vmatpush.bf16.xpose.msra.mxu0 %v353_v7  ;;  %v337_v10 = vld [vmem:[%s300_s14 + $0x4] sm:$0xf]  ;;  %v336_v11 = vld [vmem:[%s300_s14] sm:$0xf]  ;;  %327 = vst.msk [vmem:[#allocation3] sm:$0xff] %vm322_vm1, %v1082_v26  ;;  %s903_s11 = sshll.u32 %s1070_s21, 3 }
  0x1c   : > { %329 = vst.msk [vmem:[#allocation3 + $0x10] sm:$0xff] %vm322_vm1, %v1082_v26  ;;  %v1224_v30 = vld [vmem:[#allocation2 + $0x10] sm:$0xff]  ;;  %v347_v43 = vld [vmem:[%s316_s17 + $0xc] sm:$0xf]  ;;  %v345_v45 = vld [vmem:[%s316_s17 + $0x4] sm:$0xf]  ;;  %s755_s15 = scalar_lea.hbm %s1346_s5, %s903_s11 }
  0x1d   : > { %330 = vst.msk [vmem:[#allocation3 + $0x18] sm:$0xff] %vm322_vm1, %v1082_v26  ;;  %v1248_v39 = vld [vmem:[#allocation2] sm:$0xff]  ;;  %v612_v44 = vsel %vm553_vm2, %v347_v43, 0  ;;  %v574_v46 = vsel %vm553_vm2, %v345_v45, 0  ;;  %v346_v48 = vld [vmem:[%s316_s17 + $0x8] sm:$0xf] }
  0x1e   : > { %332 = vst.msk [vmem:[#allocation4] sm:$0xff] %vm331_vm0, %v1082_v26  ;;  %v1219_v27 = vld [vmem:[#allocation2 + $0x8] sm:$0xff]  ;;  %v344_v47 = vld [vmem:[%s316_s17] sm:$0xf]  ;;  %v593_v50 = vsel %vm553_vm2, %v346_v48, 0  ;;  %s744_s21 = scalar_lea.sflag [#allocation6], %s290_s10 }
  0x1f   : > { %333 = vst.msk [vmem:[#allocation4 + $0x8] sm:$0xff] %vm331_vm0, %v1082_v26  ;;  %v555_v49 = vsel %vm553_vm2, %v344_v47, 0  ;;  %s1020_s11 = scalar_lea.hbm %s1346_s5, 16 }
  0x20   : > { %334 = vst.msk [vmem:[#allocation4 + $0x10] sm:$0xff] %vm331_vm0, %v1082_v26  ;;  %v1238_v35 = vld [vmem:[#allocation2 + $0x18] sm:$0xff] }
  0x21   : > { %887 = vmatmul.msk.bf16.vlgmr.msra.gmra.mxu2 %vm331_vm0, %v338_v8  ;;  %888 = vmatmul.msk.bf16.vlgmr.msra.gmra.mxu3 %vm331_vm0, %v339_v9  ;;  %335 = vst.msk [vmem:[#allocation4 + $0x18] sm:$0xff] %vm331_vm0, %v1082_v26 }
  0x22   : > { %886 = vmatmul.msk.bf16.vlgmr.msra.gmra.mxu1 %vm331_vm0, %v337_v10  ;;  %885 = vmatmul.msk.bf16.vlgmr.msra.gmra.mxu0 %vm331_vm0, %v336_v11  ;;  %v489_v25 = vld [vmem:[#allocation3] sm:$0xff] }
  0x23   : > { %621 = vmatpush.bf16.msrb.mxu3 %v612_v44  ;;  %583 = vmatpush.bf16.msrb.mxu1 %v574_v46 }
  0x24   : > { %564 = vmatpush.bf16.msrb.mxu0 %v555_v49  ;;  %602 = vmatpush.bf16.msrb.mxu2 %v593_v50 }
  0x26   : > { %v519_v49 = vld [vmem:[#allocation4 + $0x8] sm:$0xff] }
  0x27   : > { %v520_v44 = vld [vmem:[#allocation4 + $0x10] sm:$0xff] }
  0x9f   : > { %v1195_v13 = vpop.f32.mrf.mxu1  ;;  %v1199_v15 = vpop.f32.mrf.mxu0 }
  0xa0   : > { %v432_v14 = vsel %vm331_vm0, %v1195_v13, -inf  ;;  %v429_v24 = vsel %vm331_vm0, %v1199_v15, -inf }
  0xa1   : > { %433 = vmax.xlane.f32.xlu1 %v432_v14 }
  0xa4   : > { %v1201_v16 = vpop.f32.mrf.mxu2  ;;  %v1203_v17 = vpop.f32.mrf.mxu3 }
  0xa5   : > { %v435_v18 = vsel %vm331_vm0, %v1201_v16, -inf  ;;  %v438_v21 = vsel %vm331_vm0, %v1203_v17, -inf }
  0xa6   : > { %436 = vmax.xlane.f32.xlu0 %v435_v18  ;;  %v490_v18 = vld [vmem:[#allocation3 + $0x8] sm:$0xff] }
  0xa7   : > { %v385_v19 = vpop.f32.mrf.mxu1  ;;  %v366_v20 = vpop.f32.mrf.mxu0 }
  0xac   : > { %v404_v22 = vpop.f32.mrf.mxu2  ;;  %v423_v23 = vpop.f32.mrf.mxu3 }
  0xad   : > { %v491_v22 = vld [vmem:[#allocation3 + $0x10] sm:$0xff]  ;;  %v492_v23 = vld [vmem:[#allocation3 + $0x18] sm:$0xff] }
  0xae   : > { %439 = vmax.xlane.f32.xlu0 %v438_v21 }
  0xb6   : > { %430 = vmax.xlane.f32.xlu0 %v429_v24 }
 0x114   : > { %v434_v28 = vpop.xlane.xlu1 %433 }
 0x115   : > { %v1222_v29 = vmax.f32 %v1219_v27, %v434_v28 }
 0x117   : > { %v446_v31 = vsub.f32 %v1219_v27, %v1222_v29  ;;  %636 = vst.msk [vmem:[#allocation2 + $0x8] sm:$0xff] %vm322_vm1, %v1222_v29 }
 0x119   : > { %v437_v32 = vpop.xlane.xlu0 %436  ;;  %v451_v11 = vmul.f32 1.442695, %v446_v31 }
 0x11a   : > { %v1231_v33 = vmax.f32 %v1224_v30, %v437_v32 }
 0x11c   : > { %v447_v34 = vsub.f32 %v1224_v30, %v1231_v33  ;;  %637 = vst.msk [vmem:[#allocation2 + $0x10] sm:$0xff] %vm322_vm1, %v1231_v33  ;;  %469 = vperm.xlu1 %972, %v1231_v33  }
 0x11e   : > { %v453_v12 = vmul.f32 1.442695, %v447_v34 }
 0x121   : > { %v440_v36 = vpop.xlane.xlu0 %439 }
 0x122   : > { %v1241_v37 = vmax.f32 %v1238_v35, %v440_v36 }
 0x124   : > { %v448_v38 = vsub.f32 %v1238_v35, %v1241_v37  ;;  %638 = vst.msk [vmem:[#allocation2 + $0x18] sm:$0xff] %vm322_vm1, %v1241_v37  ;;  %474 = vperm.xlu2 %973, %v1241_v37  }
 0x129   : > { %v431_v40 = vpop.xlane.xlu0 %430 }
 0x12a   : > { %v1251_v41 = vmax.f32 %v1248_v39, %v431_v40 }
 0x12c   : > { %464 = vperm.xlu2 %973, %v1222_v29   ;;  %v445_v42 = vsub.f32 %v1248_v39, %v1251_v41  ;;  %635 = vst.msk [vmem:[#allocation2] sm:$0xff] %vm322_vm1, %v1251_v41 }
 0x134   : > { %459 = vperm.xlu2 %973, %v1251_v41  }
 0x17e   : > { %v475_v51 = vpop.permute.xlu2 %474 }
 0x17f   : > { %v480_v52 = vsub.f32 %v1203_v17, %v475_v51  ;;  %v449_v17 = vmul.f32 1.442695, %v445_v42 }
 0x181   : > { %v487_v53 = vmul.f32 1.442695, %v480_v52 }
 0x183   : > { %976 = vpow2.f32 %v487_v53 }
 0x186   : > { %v465_v54 = vpop.permute.xlu2 %464 }
 0x187   : > { %v478_v55 = vsub.f32 %v1195_v13, %v465_v54  ;;  %v455_v13 = vmul.f32 1.442695, %v448_v38 }
 0x189   : > { %v977_v56 = vpop.eup %976  ;;  %v483_v57 = vmul.f32 1.442695, %v478_v55 }
 0x18a   : > { %v549_v58 = vpack.c.bf16 %v977_v56, %v977_v56  ;;  %v506_v6 = vsel %vm331_vm0, %v977_v56, 0.0 }
 0x18b   : > { %978 = vpow2.f32 %v483_v57  ;;  %v521_v57 = vld [vmem:[#allocation4 + $0x18] sm:$0xff] }
 0x18c   : > { %892 = vmatmul.msk.bf16.vlgmr.msrb.gmra.mxu3 %vm331_vm0, %v549_v58 }
 0x18e   : > { %v470_v59 = vpop.permute.xlu1 %469  ;;  %v460_v60 = vpop.permute.xlu2 %459 }
 0x18f   : > { %v479_v61 = vsub.f32 %v1201_v16, %v470_v59  ;;  %v477_v62 = vsub.f32 %v1199_v15, %v460_v60 }
 0x191   : > { %v979_v63 = vpop.eup %978  ;;  %v485_v0 = vmul.f32 1.442695, %v479_v61  ;;  %v481_v1 = vmul.f32 1.442695, %v477_v62 }
 0x192   : > { %v500_v2 = vsel %vm331_vm0, %v979_v63, 0.0  ;;  %v547_v3 = vpack.c.bf16 %v979_v63, %v979_v63 }
 0x193   : > { %980 = vpow2.f32 %v485_v0  ;;  %501 = vadd.xlane.f32.xlu0 %v500_v2 }
 0x194   : > { %982 = vpow2.f32 %v481_v1  ;;  %890 = vmatmul.msk.bf16.vlgmr.msrb.gmra.mxu1 %vm331_vm0, %v547_v3 }
 0x195   : > { %984 = vpow2.f32 %v451_v11 }
 0x196   : > { %986 = vpow2.f32 %v453_v12 }
 0x197   : > { %988 = vpow2.f32 %v455_v13 }
 0x198   : > { %990 = vpow2.f32 %v449_v17 }
 0x199   : > { %v981_v4 = vpop.eup %980 }
 0x19a   : > { %v983_v5 = vpop.eup %982  ;;  %v503_v7 = vsel %vm331_vm0, %v981_v4, 0.0  ;;  %v548_v8 = vpack.c.bf16 %v981_v4, %v981_v4 }
 0x19b   : > { %507 = vadd.xlane.f32.xlu0 %v506_v6  ;;  %504 = vadd.xlane.f32.xlu2 %v503_v7  ;;  %v497_v9 = vsel %vm331_vm0, %v983_v5, 0.0  ;;  %v546_v10 = vpack.c.bf16 %v983_v5, %v983_v5  ;;  %v985_v14 = vpop.eup %984 }
 0x19c   : > { %498 = vadd.xlane.f32.xlu1 %v497_v9  ;;  %891 = vmatmul.msk.bf16.vlgmr.msrb.gmra.mxu2 %vm331_vm0, %v548_v8  ;;  %v987_v15 = vpop.eup %986  ;;  %v494_v19 = vmul.f32 %v985_v14, %v490_v18 }
 0x19d   : > { %889 = vmatmul.msk.bf16.vlgmr.msrb.gmra.mxu0 %vm331_vm0, %v546_v10  ;;  %v989_v16 = vpop.eup %988  ;;  %v495_v26 = vmul.f32 %v987_v15, %v491_v22  ;;  %v909_v22 = vld [vmem:[%s1344_s3] sm:$0xff] }
 0x19e   : > { %v991_v24 = vpop.eup %990  ;;  %v496_v27 = vmul.f32 %v989_v16, %v492_v23 }
 0x19f   : > { %v493_v28 = vmul.f32 %v991_v24, %v489_v25 }
 0x1af   : > { %529 = vperm.xlu0 %974, %v985_v14  }
 0x1b3   : > { %534 = vperm.xlu2 %973, %v987_v15  }
 0x1b5   : > { %539 = vperm.xlu1 %972, %v989_v16   ;;  %v518_v16 = vld [vmem:[#allocation4] sm:$0xff] }
 0x206   : > { %v502_v20 = vpop.xlane.xlu0 %501 }
 0x207   : > { %v510_v21 = vadd.f32 %v502_v20, %v494_v19 }
 0x209   : > { %515 = vst.msk [vmem:[#allocation3 + $0x8] sm:$0xff] %vm322_vm1, %v510_v21  ;;  %v910_v21 = vld [vmem:[%s1344_s3 + $0x8] sm:$0xff] }
 0x20a   : > { %735 = vmatpush.bf16.msra.mxu0 %v910_v21 }
 0x20e   : > { %v505_v29 = vpop.xlane.xlu2 %504  ;;  %v508_v30 = vpop.xlane.xlu0 %507  ;;  %736 = vmatpush.bf16.msra.mxu0 %v909_v22 }
 0x20f   : > { %v499_v31 = vpop.xlane.xlu1 %498  ;;  %v511_v32 = vadd.f32 %v505_v29, %v495_v26  ;;  %v512_v33 = vadd.f32 %v508_v30, %v496_v27  ;;  %v623_v34 = vpop.f32.mrf.mxu3 }
 0x210   : > { %v509_v35 = vadd.f32 %v499_v31, %v493_v28  ;;  %v643_v36 = vld [vmem:[#allocation3 + $0x8] sm:$0xff] }
 0x211   : > { %516 = vst.msk [vmem:[#allocation3 + $0x10] sm:$0xff] %vm322_vm1, %v511_v32  ;;  %v585_v37 = vpop.f32.mrf.mxu1  ;;  %992 = vrcp.f32 %v643_v36 }
 0x212   : > { %514 = vst.msk [vmem:[#allocation3] sm:$0xff] %vm322_vm1, %v509_v35 }
 0x213   : > { %517 = vst.msk [vmem:[#allocation3 + $0x18] sm:$0xff] %vm322_vm1, %v512_v33  ;;  %v975_v33 = vld [vmem:[%s1345_s4] ss:$0 sm:$0xff] }
 0x216   : > { %v535_v45 = vpop.permute.xlu2 %534 }
 0x217   : > { %v993_v38 = vpop.eup %992  ;;  %v625_v39 = vpop.f32.mrf.mxu3  ;;  %v544_v46 = vmul.f32 %v535_v45, %v520_v44 }
 0x218   : > { %661 = vperm.xlu0 %974, %v993_v38   ;;  %v644_v40 = vld [vmem:[#allocation3 + $0x10] sm:$0xff] }
 0x219   : > { %v587_v41 = vpop.f32.mrf.mxu1  ;;  %994 = vrcp.f32 %v644_v40  ;;  %v642_v51 = vld [vmem:[#allocation3] sm:$0xff] }
 0x21a   : > { %v566_v42 = vpop.f32.mrf.mxu0  ;;  %v645_v43 = vld [vmem:[#allocation3 + $0x18] sm:$0xff] }
 0x21b   : > { %996 = vrcp.f32 %v645_v43 }
 0x21c   : > { %998 = vrcp.f32 %v642_v51 }
 0x21f   : > { %v995_v47 = vpop.eup %994  ;;  %v604_v48 = vpop.f32.mrf.mxu2 }
 0x220   : > { %v629_v50 = vadd.f32 %v604_v48, %v544_v46  ;;  %666 = vperm.xlu0 %974, %v995_v47  }
 0x221   : > { %v997_v52 = vpop.eup %996  ;;  %v530_v53 = vpop.permute.xlu0 %529 }
 0x222   : > { %633 = vst.msk [vmem:[#allocation4 + $0x10] sm:$0xff] %vm331_vm0, %v629_v50  ;;  %671 = vperm.xlu2 %973, %v997_v52   ;;  %v543_v54 = vmul.f32 %v530_v53, %v519_v49  ;;  %v568_v55 = vpop.f32.mrf.mxu0  ;;  %v999_v61 = vpop.eup %998 }
 0x224   : > { %v628_v56 = vadd.f32 %v585_v37, %v543_v54 }
 0x226   : > { %632 = vst.msk [vmem:[#allocation4 + $0x8] sm:$0xff] %vm331_vm0, %v628_v56 }
 0x227   : > { %v540_v58 = vpop.permute.xlu1 %539  ;;  %v606_v59 = vpop.f32.mrf.mxu2 }
 0x228   : > { %v545_v60 = vmul.f32 %v540_v58, %v521_v57  ;;  %524 = vperm.xlu0 %974, %v991_v24  }
 0x229   : > { %v652_v11 = vld [vmem:[#allocation4 + $0x10] sm:$0xff] }
 0x22a   : > { %v630_v62 = vadd.f32 %v623_v34, %v545_v60  ;;  %656 = vperm.xlu2 %973, %v999_v61  }
 0x22c   : > { %634 = vst.msk [vmem:[#allocation4 + $0x18] sm:$0xff] %vm331_vm0, %v630_v62 }
 0x22d   : > { %v651_v5 = vld [vmem:[#allocation4 + $0x8] sm:$0xff] }
 0x233   : > { %v653_v63 = vld [vmem:[#allocation4 + $0x18] sm:$0xff] }
 0x27c   : > { %v672_v0 = vpop.permute.xlu2 %671 }
 0x27d   : > { %v677_v1 = vmul.f32 %v672_v0, %v653_v63 }
 0x27f   : > { %v681_v2 = vpack.c.bf16 %v677_v1, %v677_v1 }
 0x281   : > { %v693_v3 = vunpack.c.l.b16 %v681_v2 }
 0x283   : > { %v694_v4 = vpack.c.b16 %v693_v3, %v693_v3 }
 0x284   : > { %v657_v24 = vpop.permute.xlu2 %656 }
 0x285   : > { %695 = vrot.lane.b32.xlu2 %v694_v4, %s1083_s24  ;;  %s292_s24 = scalar_lea.vmem [#allocation5], %s878_s12 }
 0x28a   : > { %v662_v6 = vpop.permute.xlu0 %661 }
 0x28b   : > { %v675_v7 = vmul.f32 %v662_v6, %v651_v5 }
 0x28d   : > { %v679_v8 = vpack.c.bf16 %v675_v7, %v675_v7 }
 0x28f   : > { %v683_v9 = vunpack.c.l.b16 %v679_v8 }
 0x291   : > { %v684_v10 = vpack.c.b16 %v683_v9, %v683_v9 }
 0x292   : > { %v667_v12 = vpop.permute.xlu0 %666 }
 0x293   : > { %v676_v13 = vmul.f32 %v667_v12, %v652_v11  ;;  %685 = vrot.lane.b32.xlu1 %v684_v10, %s1084_s25  ;;  %s757_s25 = sshll.u32 %s292_s24, 4  ;;  %s758_s25 = int_to_ptr.vmem [resolvable:$true] %s757_s25 }
 0x295   : > { %v680_v14 = vpack.c.bf16 %v676_v13, %v676_v13 }
 0x297   : > { %v688_v15 = vunpack.c.l.b16 %v680_v14 }
 0x299   : > { %v689_v17 = vpack.c.b16 %v688_v15, %v688_v15 }
 0x29a   : > { %v525_v18 = vpop.permute.xlu0 %524 }
 0x29b   : > { %v542_v19 = vmul.f32 %v525_v18, %v518_v16  ;;  %690 = vrot.lane.b32.xlu0 %v689_v17, %s1085_s27  ;;  %s759_s27 = sshll.u32 %s755_s15, 4  ;;  %s760_s27 = int_to_ptr.hbm [resolvable:$true] %s759_s27 }
 0x29c   : > { %s1014_s29 = sshra.s32 %s760_s27, 4  ;;  %s1015_s29 = int_to_ptr.hbm [resolvable:$true] %s1014_s29 }
 0x29d   : > { %v627_v20 = vadd.f32 %v566_v42, %v542_v19  ;;  %s1016_s7 = scalar_lea.hbm %s1015_s29, 8  ;;  %p1021_p1 = scmp.lt.s32.totalorder %s1015_s29, %s1346_s5 }
 0x29e   : > { %p1017_p12 = scmp.ne.s32.totalorder %s1015_s29, %s1016_s7  ;;  %p1022_p2 = scmp.lt.s32.totalorder %s1020_s11, %s1016_s7 }
 0x29f   : > { %631 = vst.msk [vmem:[#allocation4] sm:$0xff] %vm331_vm0, %v627_v20 }
 0x2a0   : > { %p1018_p13 = pnand %p1017_p12, %p1156_p4  ;;  %p1023_p3 = por %p1022_p2, %p1021_p1 }
 0x2a2   : > { %p1019_p0 = pneg %p1018_p13 }
 0x2a4   : > { %p1024_p5 = pnand %p1023_p3, %p1019_p0 }
 0x2a6   : > { %v650_v23 = vld [vmem:[#allocation4] sm:$0xff] }
 0x2a7   : > { %v674_v25 = vmul.f32 %v657_v24, %v650_v23 }
 0x2a9   : > { %v678_v27 = vpack.c.bf16 %v674_v25, %v674_v25 }
 0x2df   : > { %v696_v30 = vpop.permute.xlu2 %695 }
 0x305   : > { %v686_v26 = vpop.permute.xlu1 %685 }
 0x306   : > { %v699_v28 = vsel %vm331_vm0, %v678_v27, %v686_v26 }
 0x30d   : > { %v691_v29 = vpop.permute.xlu0 %690 }
 0x30e   : > { %v702_v31 = vsel %vm700_vm3, %v699_v28, %v691_v29 }
 0x30f   : > { %v705_v32 = vsel %vm703_vm4, %v702_v31, %v696_v30 }
 0x310   : > { %901 = vmatmul.msk.bf16.vlgmr.msra.gmra.mxu0 %vm726_vm5, %v705_v32 }
 0x38d   : > { %v738_v34 = vpop.f32.mrf.mxu0 }
 0x38e   : > { %v739_v35 = vadd.f32 %v975_v33, %v738_v34 }
 0x390   : > { %742 = vst.msk [vmem:[%s292_s24] sm:$0xff] %vm726_vm5, %v739_v35 }
 0x391   : > { %1027 = shalt.err (!%p1024_p5)
}
 0x392   : > { %911 = dma.vmem_to_hbm [thread:$0]  (%p1156_p4), %s758_s25, 128, %s760_s27, %s744_s21  }
 0x395   : > { %v740_v36 = vpop.f32.mrf.mxu0 }
 0x396 PF: > { %p917_p6 = scmp.ge.s32.totalorder %s1078_s23, 2  ;;  %s771_s10 = sand.u32 1, %s1058_s18  }
 0x397   : > { %s772_s14 = scalar_lea.sflag [#allocation6], %s771_s10 }
 0x398   : > { %p914_p7 = pnand %p917_p6, %p1163_p8 }
 0x39a   : > { %p915_p9 = pneg %p914_p7 }
 0x39c   : > { %1053 = dma.done.wait (%p915_p9), %s772_s14, 128  }
 0x39d   : > { %1055 = vsyncadd (%p915_p9), %s772_s14, 4294967168  ;;  %s18_s23 = sadd.s32 1, %s1078_s23   ;;  %s1349_s18 = smov %s1062_s19 }
 0x39e   : > { %p15_p10 = scmp.ge.s32.totalorder %s18_s23, 4   ;;  %s1350_s19 = smov %s1066_s20 }
 0x39f   : > { %s1351_s20 = smov %s1169_s6  ;;  %s1352_s21 = smov %s1074_s22 }
 0x3a0   : > { %s1353_s22 = smov %s1355_s26  ;;  %17 = sbr.rel (!%p15_p10) target bundleno = 4 (0x4), region = 89 }
 0x3a5   :  { %778 = vsyncpa [#allocation6], 1 }
 0x3a6   :  { %780 = vsyncpa [#allocation6 + $0x1], 1 }

</bundles_post_ra>
